<compile_context>
chip_gen: v5e
topology: v5e:2x2
jax: 0.10.0
libtpu: 0.0.40
codegen_flags: <defaults>
</compile_context>

<pallas_src>
import functools
import math

import jax
import jax.numpy as jnp
from jax.experimental import pallas as pl
from jax.experimental.pallas import tpu as pltpu

# ---------------- model hyperparameters (small synthetic BERT) ----------------
VOCAB = 100
HIDDEN = 32
FFN = 64
NUM_HEADS = 2
NUM_LAYERS = 2
MAX_SEQ = 16
LN_EPS = 1e-12


# ------------------------------- kernel helpers --------------------------------
def _layernorm(x, g, b, eps=LN_EPS):
    mean = jnp.mean(x, axis=-1, keepdims=True)
    var = jnp.mean((x - mean) ** 2, axis=-1, keepdims=True)
    return (x - mean) * jax.lax.rsqrt(var + eps) * g + b


# ------------------------------- fused layer kernel ----------------------------
def _bert_layer_kernel(x_ref, mask_ref,
                       emb_g_ref, emb_b_ref,
                       wqkv_ref, bqkv_ref, wo_ref, bo_ref,
                       ln1g_ref, ln1b_ref,
                       w1_ref, b1_ref, w2_ref, b2_ref,
                       ln2g_ref, ln2b_ref,
                       poolw_ref, poolb_ref,
                       o_ref,
                       x_scr, ctx_scr,
                       *, num_heads, num_layers, hidden):
    """One (batch element, layer) grid step. Residual stream lives in x_scr."""
    li = pl.program_id(1)
    dh = hidden // num_heads
    bf16 = jnp.bfloat16

    # ---- first layer for this batch element: embedding LayerNorm into scratch ----
    @pl.when(li == 0)
    def _():
        x_scr[...] = _layernorm(x_ref[0], emb_g_ref[...], emb_b_ref[...])

    x = x_scr[...]                                      # (S, H) f32 residual stream
    xb = x.astype(bf16)

    # ---- fused QKV projection: one MXU pass (bf16 operands, f32 accumulate) ----
    # NOTE: the 1/sqrt(dh) attention scale is already folded into the Q columns.
    qkv = jnp.dot(xb, wqkv_ref[0], preferred_element_type=jnp.float32) + bqkv_ref[0]

    # additive key mask, built once per grid step: 0 where keep, -1e9 where padded
    neg_mask = (mask_ref[0] - 1.0) * 1e9                # (1, S)

    # ---- multi-head attention: static head loop, context written straight into
    # a VMEM scratch slice (no lane-axis concat over heads) ----
    for h in range(num_heads):
        qh = qkv[:, h * dh:(h + 1) * dh].astype(bf16)                          # (S, dh)
        kh = qkv[:, hidden + h * dh: hidden + (h + 1) * dh].astype(bf16)       # (S, dh)
        vh = qkv[:, 2 * hidden + h * dh: 2 * hidden + (h + 1) * dh].astype(bf16)
        s = jnp.einsum('qd,kd->qk', qh, kh,
                       preferred_element_type=jnp.float32)                     # (S, S) f32
        s = s + neg_mask
        s = s - jnp.max(s, axis=-1, keepdims=True)
        p = jnp.exp(s)
        p = p * pl.reciprocal(jnp.sum(p, axis=-1, keepdims=True), approx=True)
        ctx_scr[:, pl.ds(h * dh, dh)] = jnp.dot(p.astype(bf16), vh,
                                                preferred_element_type=jnp.float32)

    # ---- attention output projection + residual + LayerNorm ----
    attn = jnp.dot(ctx_scr[...].astype(bf16), wo_ref[0],
                   preferred_element_type=jnp.float32) + bo_ref[0]
    x1 = _layernorm(attn + x, ln1g_ref[0], ln1b_ref[0])                        # (S, H) f32

    # ---- FFN + residual + LayerNorm: full rows for all but the last layer ----
    @pl.when(li < num_layers - 1)
    def _():
        h1 = jnp.dot(x1.astype(bf16), w1_ref[0],
                     preferred_element_type=jnp.float32) + b1_ref[0]
        # TODO(synk): HF BERT uses exact erf-GELU; tanh approximation kept for robust lowering.
        h1 = jax.nn.gelu(h1, approximate=True)
        h2 = jnp.dot(h1.astype(bf16), w2_ref[0],
                     preferred_element_type=jnp.float32) + b2_ref[0]
        x_scr[...] = _layernorm(h2 + x1, ln2g_ref[0], ln2b_ref[0])

    # ---- last layer: only the CLS row feeds pooler_output, so restrict the
    # FFN + LayerNorm + pooler to that single row ----
    @pl.when(li == num_layers - 1)
    def _():
        cls = x1[0:1, :]                                                       # (1, H)
        h1 = jnp.dot(cls.astype(bf16), w1_ref[0],
                     preferred_element_type=jnp.float32) + b1_ref[0]
        h1 = jax.nn.gelu(h1, approximate=True)
        h2 = jnp.dot(h1.astype(bf16), w2_ref[0],
                     preferred_element_type=jnp.float32) + b2_ref[0]
        x2 = _layernorm(h2 + cls, ln2g_ref[0], ln2b_ref[0])
        pooled = jnp.tanh(jnp.dot(x2.astype(bf16), poolw_ref[...],
                                  preferred_element_type=jnp.float32) + poolb_ref[...])
        o_ref[0] = pooled                                                      # (1, H)


# ------------------------------ parameter setup --------------------------------
def init_params(key):
    def nrm(k, shape, scale=0.02):
        return scale * jax.random.normal(k, shape, dtype=jnp.float32)

    dh = HIDDEN // NUM_HEADS
    qk_scale = 1.0 / math.sqrt(dh)

    keys = jax.random.split(key, 8 + NUM_LAYERS)
    params = {
        "word_emb": nrm(keys[0], (VOCAB, HIDDEN)),
        "pos_emb": nrm(keys[1], (MAX_SEQ, HIDDEN)),
        "type_emb": nrm(keys[2], (2, HIDDEN)),
        "emb_ln_g": jnp.ones((1, HIDDEN), jnp.float32),
        "emb_ln_b": jnp.zeros((1, HIDDEN), jnp.float32),
        "pool_w": nrm(keys[3], (HIDDEN, HIDDEN)).astype(jnp.bfloat16),
        "pool_b": jnp.zeros((1, HIDDEN), jnp.float32),
    }
    wqkv, wo, w1, w2 = [], [], [], []
    for li in range(NUM_LAYERS):
        lk = jax.random.split(keys[8 + li], 8)
        # fold the 1/sqrt(dh) attention scale into the Q weight columns (and it
        # would also apply to the Q bias slice, which is zero here)
        wq = nrm(lk[0], (HIDDEN, HIDDEN)) * qk_scale
        wk = nrm(lk[1], (HIDDEN, HIDDEN))
        wv = nrm(lk[2], (HIDDEN, HIDDEN))
        wqkv.append(jnp.concatenate([wq, wk, wv], axis=1))           # (H, 3H) fused QKV
        wo.append(nrm(lk[3], (HIDDEN, HIDDEN)))
        w1.append(nrm(lk[4], (HIDDEN, FFN)))
        w2.append(nrm(lk[5], (FFN, HIDDEN)))
    params.update({
        # matmul weights stored bf16 (MXU-native, halves weight DMA / VMEM);
        # biases and LayerNorm params stay f32.
        "wqkv": jnp.stack(wqkv).astype(jnp.bfloat16),                # (L, H, 3H)
        "bqkv": jnp.zeros((NUM_LAYERS, 1, 3 * HIDDEN), jnp.float32),
        "wo": jnp.stack(wo).astype(jnp.bfloat16),                    # (L, H, H)
        "bo": jnp.zeros((NUM_LAYERS, 1, HIDDEN), jnp.float32),
        "ln1_g": jnp.ones((NUM_LAYERS, 1, HIDDEN), jnp.float32),
        "ln1_b": jnp.zeros((NUM_LAYERS, 1, HIDDEN), jnp.float32),
        "w1": jnp.stack(w1).astype(jnp.bfloat16),                    # (L, H, FFN)
        "b1": jnp.zeros((NUM_LAYERS, 1, FFN), jnp.float32),
        "w2": jnp.stack(w2).astype(jnp.bfloat16),                    # (L, FFN, H)
        "b2": jnp.zeros((NUM_LAYERS, 1, HIDDEN), jnp.float32),
        "ln2_g": jnp.ones((NUM_LAYERS, 1, HIDDEN), jnp.float32),
        "ln2_b": jnp.zeros((NUM_LAYERS, 1, HIDDEN), jnp.float32),
    })
    return params


# --------------------------------- forward -------------------------------------
def text_model_forward(params, input_ids, attention_mask):
    """Returns the BERT 'pooler_output': tanh(W_pool @ h_cls + b_pool), shape (B, HIDDEN)."""
    batch, seq = input_ids.shape

    # TODO(synk): fuse the embedding gather into the kernel (scalar-prefetched ids
    # + manual DMA row gather) to save one (B*S, H) HBM round-trip at real dims.
    x = (params["word_emb"][input_ids]
         + params["pos_emb"][:seq][None, :, :]
         + params["type_emb"][0][None, None, :]).astype(jnp.float32)     # (B, S, H)
    mask = attention_mask.astype(jnp.float32).reshape(batch, 1, seq)     # (B, 1, S)

    kernel = functools.partial(
        _bert_layer_kernel,
        num_heads=NUM_HEADS, num_layers=NUM_LAYERS, hidden=HIDDEN)

    # per-layer weight: block index follows the layer grid axis (streamed)
    def layer_w(*tail):
        return pl.BlockSpec((1,) + tail, lambda b, l, _t=tail: (l,) + (0,) * len(_t))

    # shared weight: single block, resident for the whole kernel
    def shared(*shape):
        return pl.BlockSpec(shape, lambda b, l, _s=shape: (0,) * len(_s))

    grid_spec = pltpu.PrefetchScalarGridSpec(
        num_scalar_prefetch=0,
        grid=(batch, NUM_LAYERS),                       # batch parallel, layers sequential
        in_specs=[
            pl.BlockSpec((1, seq, HIDDEN), lambda b, l: (b, 0, 0)),   # embeddings
            pl.BlockSpec((1, 1, seq), lambda b, l: (b, 0, 0)),        # attention mask
            shared(1, HIDDEN), shared(1, HIDDEN),                     # embedding LayerNorm
            layer_w(HIDDEN, 3 * HIDDEN), layer_w(1, 3 * HIDDEN),      # wqkv, bqkv
            layer_w(HIDDEN, HIDDEN), layer_w(1, HIDDEN),              # wo, bo
            layer_w(1, HIDDEN), layer_w(1, HIDDEN),                   # LayerNorm 1
            layer_w(HIDDEN, FFN), layer_w(1, FFN),                    # w1, b1
            layer_w(FFN, HIDDEN), layer_w(1, HIDDEN),                 # w2, b2
            layer_w(1, HIDDEN), layer_w(1, HIDDEN),                   # LayerNorm 2
            shared(HIDDEN, HIDDEN), shared(1, HIDDEN),                # pooler
        ],
        out_specs=pl.BlockSpec((1, 1, HIDDEN), lambda b, l: (b, 0, 0)),
        scratch_shapes=[
            pltpu.VMEM((seq, HIDDEN), jnp.float32),     # residual stream, carried over layers
            pltpu.VMEM((seq, HIDDEN), jnp.float32),     # per-head attention context
        ],
    )

    pooled = pl.pallas_call(
        kernel,
        out_shape=jax.ShapeDtypeStruct((batch, 1, HIDDEN), jnp.float32),
        grid_spec=grid_spec,
        compiler_params=pltpu.CompilerParams(
            dimension_semantics=("parallel", "arbitrary"),
            # raise when scaling to real BERT dims (leave double-buffer headroom)
            vmem_limit_bytes=32 * 1024 * 1024),
    )(x, mask,
      params["emb_ln_g"], params["emb_ln_b"],
      params["wqkv"], params["bqkv"], params["wo"], params["bo"],
      params["ln1_g"], params["ln1_b"],
      params["w1"], params["b1"], params["w2"], params["b2"],
      params["ln2_g"], params["ln2_b"],
      params["pool_w"], params["pool_b"])

    return pooled[:, 0, :]                              # (B, HIDDEN)


# ----------------------------------- main ---------------------------------------
if __name__ == "__main__":
    B, S = 2, 8
    key = jax.random.PRNGKey(0)
    k_ids, _ = jax.random.split(key)

    input_ids = jax.random.randint(k_ids, (B, S), 0, VOCAB, dtype=jnp.int32)
    attention_mask = jnp.array(
        [[1, 1, 1, 1, 1, 1, 1, 1],
         [1, 1, 1, 1, 1, 1, 0, 0]], dtype=jnp.int32)

    params = init_params(jax.random.PRNGKey(42))

    pooled = jax.jit(text_model_forward)(params, input_ids, attention_mask)
    pooled = jax.block_until_ready(pooled)

    assert pooled.shape == (B, HIDDEN)
    assert jnp.all(jnp.isfinite(pooled))
    print("KERNEL_OK")
</pallas_src>

<mosaic_0001>
module attributes {stable_mosaic.version = 11 : i64} {
  func.func @_bert_layer_kernel(%arg0: i32, %arg1: i32, %arg2: memref<1x8x32xf32, #tpu.memory_space<vmem>>, %arg3: memref<1x1x8xf32, #tpu.memory_space<vmem>>, %arg4: memref<1x32xf32, #tpu.memory_space<vmem>>, %arg5: memref<1x32xf32, #tpu.memory_space<vmem>>, %arg6: memref<1x32x96xbf16, #tpu.memory_space<vmem>>, %arg7: memref<1x1x96xf32, #tpu.memory_space<vmem>>, %arg8: memref<1x32x32xbf16, #tpu.memory_space<vmem>>, %arg9: memref<1x1x32xf32, #tpu.memory_space<vmem>>, %arg10: memref<1x1x32xf32, #tpu.memory_space<vmem>>, %arg11: memref<1x1x32xf32, #tpu.memory_space<vmem>>, %arg12: memref<1x32x64xbf16, #tpu.memory_space<vmem>>, %arg13: memref<1x1x64xf32, #tpu.memory_space<vmem>>, %arg14: memref<1x64x32xbf16, #tpu.memory_space<vmem>>, %arg15: memref<1x1x32xf32, #tpu.memory_space<vmem>>, %arg16: memref<1x1x32xf32, #tpu.memory_space<vmem>>, %arg17: memref<1x1x32xf32, #tpu.memory_space<vmem>>, %arg18: memref<32x32xbf16, #tpu.memory_space<vmem>>, %arg19: memref<1x32xf32, #tpu.memory_space<vmem>>, %arg20: memref<1x1x32xf32, #tpu.memory_space<vmem>>, %arg21: memref<8x32xf32, #tpu.memory_space<vmem>>, %arg22: memref<8x32xf32, #tpu.memory_space<vmem>>) attributes {dimension_semantics = [#tpu.dimension_semantics<parallel>, #tpu.dimension_semantics<arbitrary>], iteration_bounds = array<i64: 2, 2>, scalar_prefetch = 0 : i64, scratch_operands = 2 : i64, tpu.core_type = #tpu.core_type<tc>, window_params = [{transform_indices = @transform_0, window_bounds = array<i64: 1, 8, 32>}, {transform_indices = @transform_1, window_bounds = array<i64: 1, 1, 8>}, {pipeline_mode = #tpu.pipeline_mode<synchronous>, transform_indices = @transform_2, window_bounds = array<i64: 1, 32>}, {pipeline_mode = #tpu.pipeline_mode<synchronous>, transform_indices = @transform_3, window_bounds = array<i64: 1, 32>}, {transform_indices = @transform_4, window_bounds = array<i64: 1, 32, 96>}, {transform_indices = @transform_5, window_bounds = array<i64: 1, 1, 96>}, {transform_indices = @transform_6, window_bounds = array<i64: 1, 32, 32>}, {transform_indices = @transform_7, window_bounds = array<i64: 1, 1, 32>}, {transform_indices = @transform_8, window_bounds = array<i64: 1, 1, 32>}, {transform_indices = @transform_9, window_bounds = array<i64: 1, 1, 32>}, {transform_indices = @transform_10, window_bounds = array<i64: 1, 32, 64>}, {transform_indices = @transform_11, window_bounds = array<i64: 1, 1, 64>}, {transform_indices = @transform_12, window_bounds = array<i64: 1, 64, 32>}, {transform_indices = @transform_13, window_bounds = array<i64: 1, 1, 32>}, {transform_indices = @transform_14, window_bounds = array<i64: 1, 1, 32>}, {transform_indices = @transform_15, window_bounds = array<i64: 1, 1, 32>}, {pipeline_mode = #tpu.pipeline_mode<synchronous>, transform_indices = @transform_16, window_bounds = array<i64: 32, 32>}, {pipeline_mode = #tpu.pipeline_mode<synchronous>, transform_indices = @transform_17, window_bounds = array<i64: 1, 32>}, {transform_indices = @transform_18, window_bounds = array<i64: 1, 1, 32>}]} {
    %c0_i32 = arith.constant 0 : i32
    %0 = arith.cmpi eq, %arg1, %c0_i32 : i32
    %1 = arith.extui %0 : i1 to i32
    %c0_i32_0 = arith.constant 0 : i32
    %2 = arith.cmpi ne, %1, %c0_i32_0 : i32
    scf.if %2 {
      %c0_47 = arith.constant 0 : index
      %c0_48 = arith.constant 0 : index
      %c0_49 = arith.constant 0 : index
      %104 = vector.load %arg2[%c0_47, %c0_48, %c0_49] : memref<1x8x32xf32, #tpu.memory_space<vmem>>, vector<1x8x32xf32>
      %105 = vector.shape_cast %104 : vector<1x8x32xf32> to vector<8x32xf32>
      %c0_50 = arith.constant 0 : index
      %c0_51 = arith.constant 0 : index
      %106 = vector.load %arg4[%c0_50, %c0_51] : memref<1x32xf32, #tpu.memory_space<vmem>>, vector<1x32xf32>
      %c0_52 = arith.constant 0 : index
      %c0_53 = arith.constant 0 : index
      %107 = vector.load %arg5[%c0_52, %c0_53] : memref<1x32xf32, #tpu.memory_space<vmem>>, vector<1x32xf32>
      %cst_54 = arith.constant dense<0.000000e+00> : vector<8xf32>
      %108 = vector.multi_reduction <add>, %105, %cst_54 [1] : vector<8x32xf32> to vector<8xf32>
      %109 = vector.shape_cast %108 : vector<8xf32> to vector<8x1xf32>
      %cst_55 = arith.constant 3.200000e+01 : f32
      %110 = vector.broadcast %cst_55 : f32 to vector<8x1xf32>
      %111 = arith.divf %109, %110 : vector<8x1xf32>
      %112 = vector.broadcast %111 : vector<8x1xf32> to vector<8x32xf32>
      %113 = arith.subf %105, %112 : vector<8x32xf32>
      %114 = arith.mulf %113, %113 : vector<8x32xf32>
      %cst_56 = arith.constant dense<0.000000e+00> : vector<8xf32>
      %115 = vector.multi_reduction <add>, %114, %cst_56 [1] : vector<8x32xf32> to vector<8xf32>
      %116 = vector.shape_cast %115 : vector<8xf32> to vector<8x1xf32>
      %cst_57 = arith.constant 3.200000e+01 : f32
      %117 = vector.broadcast %cst_57 : f32 to vector<8x1xf32>
      %118 = arith.divf %116, %117 : vector<8x1xf32>
      %119 = vector.broadcast %111 : vector<8x1xf32> to vector<8x32xf32>
      %120 = arith.subf %105, %119 : vector<8x32xf32>
      %cst_58 = arith.constant 9.99999996E-13 : f32
      %121 = vector.broadcast %cst_58 : f32 to vector<8x1xf32>
      %122 = arith.addf %118, %121 : vector<8x1xf32>
      %123 = math.rsqrt %122 : vector<8x1xf32>
      %124 = vector.broadcast %123 : vector<8x1xf32> to vector<8x32xf32>
      %125 = arith.mulf %120, %124 : vector<8x32xf32>
      %126 = vector.broadcast %106 : vector<1x32xf32> to vector<8x32xf32>
      %127 = arith.mulf %125, %126 : vector<8x32xf32>
      %128 = vector.broadcast %107 : vector<1x32xf32> to vector<8x32xf32>
      %129 = arith.addf %127, %128 : vector<8x32xf32>
      %c0_59 = arith.constant 0 : index
      %c0_60 = arith.constant 0 : index
      %130 = vector.load %arg21[%c0_59, %c0_60] : memref<8x32xf32, #tpu.memory_space<vmem>>, vector<8x32xf32>
      tpu.vector_store %arg21[%c0_59, %c0_60], %129 {strides = array<i32>} : memref<8x32xf32, #tpu.memory_space<vmem>>, vector<8x32xf32>,
    } else {
    }
    %c0 = arith.constant 0 : index
    %c0_1 = arith.constant 0 : index
    %3 = vector.load %arg21[%c0, %c0_1] : memref<8x32xf32, #tpu.memory_space<vmem>>, vector<8x32xf32>
    %4 = arith.truncf %3 : vector<8x32xf32> to vector<8x32xbf16>
    %c0_2 = arith.constant 0 : index
    %c0_3 = arith.constant 0 : index
    %c0_4 = arith.constant 0 : index
    %5 = vector.load %arg6[%c0_2, %c0_3, %c0_4] : memref<1x32x96xbf16, #tpu.memory_space<vmem>>, vector<1x32x96xbf16>
    %6 = vector.shape_cast %5 : vector<1x32x96xbf16> to vector<32x96xbf16>
    %cst = arith.constant dense<0.000000e+00> : vector<8x96xf32>
    %7 = tpu.matmul %4, %6, %cst {dimension_numbers = #tpu.dot_dimension_numbers<[1], [0], [0], [1], [0, 0, 1, 1], [], []>} : vector<8x32xbf16>, vector<32x96xbf16>, vector<8x96xf32> -> vector<8x96xf32>
    %c0_5 = arith.constant 0 : index
    %c0_6 = arith.constant 0 : index
    %c0_7 = arith.constant 0 : index
    %8 = vector.load %arg7[%c0_5, %c0_6, %c0_7] : memref<1x1x96xf32, #tpu.memory_space<vmem>>, vector<1x1x96xf32>
    %9 = vector.shape_cast %8 : vector<1x1x96xf32> to vector<1x96xf32>
    %10 = vector.broadcast %9 : vector<1x96xf32> to vector<8x96xf32>
    %11 = arith.addf %7, %10 : vector<8x96xf32>
    %c0_8 = arith.constant 0 : index
    %c0_9 = arith.constant 0 : index
    %c0_10 = arith.constant 0 : index
    %12 = vector.load %arg3[%c0_8, %c0_9, %c0_10] : memref<1x1x8xf32, #tpu.memory_space<vmem>>, vector<1x1x8xf32>
    %13 = vector.shape_cast %12 : vector<1x1x8xf32> to vector<1x8xf32>
    %cst_11 = arith.constant 1.000000e+00 : f32
    %14 = vector.broadcast %cst_11 : f32 to vector<1x8xf32>
    %15 = arith.subf %13, %14 : vector<1x8xf32>
    %cst_12 = arith.constant 1.000000e+09 : f32
    %16 = vector.broadcast %cst_12 : f32 to vector<1x8xf32>
    %17 = arith.mulf %15, %16 : vector<1x8xf32>
    %18 = vector.extract_strided_slice %11 {offsets = [0, 0], sizes = [8, 16], strides = [1, 1]} : vector<8x96xf32> to vector<8x16xf32>
    %19 = arith.truncf %18 : vector<8x16xf32> to vector<8x16xbf16>
    %20 = vector.extract_strided_slice %11 {offsets = [0, 32], sizes = [8, 16], strides = [1, 1]} : vector<8x96xf32> to vector<8x16xf32>
    %21 = arith.truncf %20 : vector<8x16xf32> to vector<8x16xbf16>
    %22 = vector.extract_strided_slice %11 {offsets = [0, 64], sizes = [8, 16], strides = [1, 1]} : vector<8x96xf32> to vector<8x16xf32>
    %23 = arith.truncf %22 : vector<8x16xf32> to vector<8x16xbf16>
    "tpu.trace_start"() <{level = 10 : i32, message = "qd,kd->qk"}> : () -> ()
    %cst_13 = arith.constant dense<0.000000e+00> : vector<8x8xf32>
    %24 = tpu.matmul %19, %21, %cst_13 {dimension_numbers = #tpu.dot_dimension_numbers<[1], [1], [0], [0], [0, 0, 1, 0], [], []>} : vector<8x16xbf16>, vector<8x16xbf16>, vector<8x8xf32> -> vector<8x8xf32>
    "tpu.trace_stop"() : () -> ()
    %25 = vector.broadcast %17 : vector<1x8xf32> to vector<8x8xf32>
    %26 = arith.addf %24, %25 : vector<8x8xf32>
    %cst_14 = arith.constant dense<0xFF800000> : vector<8xf32>
    %27 = vector.multi_reduction <maximumf>, %26, %cst_14 [1] : vector<8x8xf32> to vector<8xf32>
    %28 = vector.shape_cast %27 : vector<8xf32> to vector<8x1xf32>
    %29 = vector.broadcast %28 : vector<8x1xf32> to vector<8x8xf32>
    %30 = arith.subf %26, %29 : vector<8x8xf32>
    %31 = math.exp %30 : vector<8x8xf32>
    %cst_15 = arith.constant dense<0.000000e+00> : vector<8xf32>
    %32 = vector.multi_reduction <add>, %31, %cst_15 [1] : vector<8x8xf32> to vector<8xf32>
    %33 = vector.shape_cast %32 : vector<8xf32> to vector<8x1xf32>
    %34 = tpu.reciprocal %33 {approx = true} : vector<8x1xf32> -> vector<8x1xf32>
    %35 = vector.broadcast %34 : vector<8x1xf32> to vector<8x8xf32>
    %36 = arith.mulf %31, %35 : vector<8x8xf32>
    %37 = arith.truncf %36 : vector<8x8xf32> to vector<8x8xbf16>
    %cst_16 = arith.constant dense<0.000000e+00> : vector<8x16xf32>
    %38 = tpu.matmul %37, %23, %cst_16 {dimension_numbers = #tpu.dot_dimension_numbers<[1], [0], [0], [1], [0, 0, 1, 1], [], []>} : vector<8x8xbf16>, vector<8x16xbf16>, vector<8x16xf32> -> vector<8x16xf32>
    %c0_17 = arith.constant 0 : index
    %c0_18 = arith.constant 0 : index
    %39 = vector.load %arg22[%c0_17, %c0_18] : memref<8x32xf32, #tpu.memory_space<vmem>>, vector<8x16xf32>
    tpu.vector_store %arg22[%c0_17, %c0_18], %38 {strides = array<i32>} : memref<8x32xf32, #tpu.memory_space<vmem>>, vector<8x16xf32>,
    %40 = vector.extract_strided_slice %11 {offsets = [0, 16], sizes = [8, 16], strides = [1, 1]} : vector<8x96xf32> to vector<8x16xf32>
    %41 = arith.truncf %40 : vector<8x16xf32> to vector<8x16xbf16>
    %42 = vector.extract_strided_slice %11 {offsets = [0, 48], sizes = [8, 16], strides = [1, 1]} : vector<8x96xf32> to vector<8x16xf32>
    %43 = arith.truncf %42 : vector<8x16xf32> to vector<8x16xbf16>
    %44 = vector.extract_strided_slice %11 {offsets = [0, 80], sizes = [8, 16], strides = [1, 1]} : vector<8x96xf32> to vector<8x16xf32>
    %45 = arith.truncf %44 : vector<8x16xf32> to vector<8x16xbf16>
    "tpu.trace_start"() <{level = 10 : i32, message = "qd,kd->qk"}> : () -> ()
    %cst_19 = arith.constant dense<0.000000e+00> : vector<8x8xf32>
    %46 = tpu.matmul %41, %43, %cst_19 {dimension_numbers = #tpu.dot_dimension_numbers<[1], [1], [0], [0], [0, 0, 1, 0], [], []>} : vector<8x16xbf16>, vector<8x16xbf16>, vector<8x8xf32> -> vector<8x8xf32>
    "tpu.trace_stop"() : () -> ()
    %47 = vector.broadcast %17 : vector<1x8xf32> to vector<8x8xf32>
    %48 = arith.addf %46, %47 : vector<8x8xf32>
    %cst_20 = arith.constant dense<0xFF800000> : vector<8xf32>
    %49 = vector.multi_reduction <maximumf>, %48, %cst_20 [1] : vector<8x8xf32> to vector<8xf32>
    %50 = vector.shape_cast %49 : vector<8xf32> to vector<8x1xf32>
    %51 = vector.broadcast %50 : vector<8x1xf32> to vector<8x8xf32>
    %52 = arith.subf %48, %51 : vector<8x8xf32>
    %53 = math.exp %52 : vector<8x8xf32>
    %cst_21 = arith.constant dense<0.000000e+00> : vector<8xf32>
    %54 = vector.multi_reduction <add>, %53, %cst_21 [1] : vector<8x8xf32> to vector<8xf32>
    %55 = vector.shape_cast %54 : vector<8xf32> to vector<8x1xf32>
    %56 = tpu.reciprocal %55 {approx = true} : vector<8x1xf32> -> vector<8x1xf32>
    %57 = vector.broadcast %56 : vector<8x1xf32> to vector<8x8xf32>
    %58 = arith.mulf %53, %57 : vector<8x8xf32>
    %59 = arith.truncf %58 : vector<8x8xf32> to vector<8x8xbf16>
    %cst_22 = arith.constant dense<0.000000e+00> : vector<8x16xf32>
    %60 = tpu.matmul %59, %45, %cst_22 {dimension_numbers = #tpu.dot_dimension_numbers<[1], [0], [0], [1], [0, 0, 1, 1], [], []>} : vector<8x8xbf16>, vector<8x16xbf16>, vector<8x16xf32> -> vector<8x16xf32>
    %c0_23 = arith.constant 0 : index
    %c16 = arith.constant 16 : index
    %61 = vector.load %arg22[%c0_23, %c16] : memref<8x32xf32, #tpu.memory_space<vmem>>, vector<8x16xf32>
    tpu.vector_store %arg22[%c0_23, %c16], %60 {strides = array<i32>} : memref<8x32xf32, #tpu.memory_space<vmem>>, vector<8x16xf32>,
    %c0_24 = arith.constant 0 : index
    %c0_25 = arith.constant 0 : index
    %62 = vector.load %arg22[%c0_24, %c0_25] : memref<8x32xf32, #tpu.memory_space<vmem>>, vector<8x32xf32>
    %63 = arith.truncf %62 : vector<8x32xf32> to vector<8x32xbf16>
    %c0_26 = arith.constant 0 : index
    %c0_27 = arith.constant 0 : index
    %c0_28 = arith.constant 0 : index
    %64 = vector.load %arg8[%c0_26, %c0_27, %c0_28] : memref<1x32x32xbf16, #tpu.memory_space<vmem>>, vector<1x32x32xbf16>
    %65 = vector.shape_cast %64 : vector<1x32x32xbf16> to vector<32x32xbf16>
    %cst_29 = arith.constant dense<0.000000e+00> : vector<8x32xf32>
    %66 = tpu.matmul %63, %65, %cst_29 {dimension_numbers = #tpu.dot_dimension_numbers<[1], [0], [0], [1], [0, 0, 1, 1], [], []>} : vector<8x32xbf16>, vector<32x32xbf16>, vector<8x32xf32> -> vector<8x32xf32>
    %c0_30 = arith.constant 0 : index
    %c0_31 = arith.constant 0 : index
    %c0_32 = arith.constant 0 : index
    %67 = vector.load %arg9[%c0_30, %c0_31, %c0_32] : memref<1x1x32xf32, #tpu.memory_space<vmem>>, vector<1x1x32xf32>
    %68 = vector.shape_cast %67 : vector<1x1x32xf32> to vector<1x32xf32>
    %69 = vector.broadcast %68 : vector<1x32xf32> to vector<8x32xf32>
    %70 = arith.addf %66, %69 : vector<8x32xf32>
    %71 = arith.addf %70, %3 : vector<8x32xf32>
    %c0_33 = arith.constant 0 : index
    %c0_34 = arith.constant 0 : index
    %c0_35 = arith.constant 0 : index
    %72 = vector.load %arg10[%c0_33, %c0_34, %c0_35] : memref<1x1x32xf32, #tpu.memory_space<vmem>>, vector<1x1x32xf32>
    %73 = vector.shape_cast %72 : vector<1x1x32xf32> to vector<1x32xf32>
    %c0_36 = arith.constant 0 : index
    %c0_37 = arith.constant 0 : index
    %c0_38 = arith.constant 0 : index
    %74 = vector.load %arg11[%c0_36, %c0_37, %c0_38] : memref<1x1x32xf32, #tpu.memory_space<vmem>>, vector<1x1x32xf32>
    %75 = vector.shape_cast %74 : vector<1x1x32xf32> to vector<1x32xf32>
    %cst_39 = arith.constant dense<0.000000e+00> : vector<8xf32>
    %76 = vector.multi_reduction <add>, %71, %cst_39 [1] : vector<8x32xf32> to vector<8xf32>
    %77 = vector.shape_cast %76 : vector<8xf32> to vector<8x1xf32>
    %cst_40 = arith.constant 3.200000e+01 : f32
    %78 = vector.broadcast %cst_40 : f32 to vector<8x1xf32>
    %79 = arith.divf %77, %78 : vector<8x1xf32>
    %80 = vector.broadcast %79 : vector<8x1xf32> to vector<8x32xf32>
    %81 = arith.subf %71, %80 : vector<8x32xf32>
    %82 = arith.mulf %81, %81 : vector<8x32xf32>
    %cst_41 = arith.constant dense<0.000000e+00> : vector<8xf32>
    %83 = vector.multi_reduction <add>, %82, %cst_41 [1] : vector<8x32xf32> to vector<8xf32>
    %84 = vector.shape_cast %83 : vector<8xf32> to vector<8x1xf32>
    %cst_42 = arith.constant 3.200000e+01 : f32
    %85 = vector.broadcast %cst_42 : f32 to vector<8x1xf32>
    %86 = arith.divf %84, %85 : vector<8x1xf32>
    %87 = vector.broadcast %79 : vector<8x1xf32> to vector<8x32xf32>
    %88 = arith.subf %71, %87 : vector<8x32xf32>
    %cst_43 = arith.constant 9.99999996E-13 : f32
    %89 = vector.broadcast %cst_43 : f32 to vector<8x1xf32>
    %90 = arith.addf %86, %89 : vector<8x1xf32>
    %91 = math.rsqrt %90 : vector<8x1xf32>
    %92 = vector.broadcast %91 : vector<8x1xf32> to vector<8x32xf32>
    %93 = arith.mulf %88, %92 : vector<8x32xf32>
    %94 = vector.broadcast %73 : vector<1x32xf32> to vector<8x32xf32>
    %95 = arith.mulf %93, %94 : vector<8x32xf32>
    %96 = vector.broadcast %75 : vector<1x32xf32> to vector<8x32xf32>
    %97 = arith.addf %95, %96 : vector<8x32xf32>
    %c1_i32 = arith.constant 1 : i32
    %98 = arith.cmpi slt, %arg1, %c1_i32 : i32
    %99 = arith.extui %98 : i1 to i32
    %c0_i32_44 = arith.constant 0 : i32
    %100 = arith.cmpi ne, %99, %c0_i32_44 : i32
    scf.if %100 {
      %104 = arith.truncf %97 : vector<8x32xf32> to vector<8x32xbf16>
      %c0_47 = arith.constant 0 : index
      %c0_48 = arith.constant 0 : index
      %c0_49 = arith.constant 0 : index
      %105 = vector.load %arg12[%c0_47, %c0_48, %c0_49] : memref<1x32x64xbf16, #tpu.memory_space<vmem>>, vector<1x32x64xbf16>
      %106 = vector.shape_cast %105 : vector<1x32x64xbf16> to vector<32x64xbf16>
      %cst_50 = arith.constant dense<0.000000e+00> : vector<8x64xf32>
      %107 = tpu.matmul %104, %106, %cst_50 {dimension_numbers = #tpu.dot_dimension_numbers<[1], [0], [0], [1], [0, 0, 1, 1], [], []>} : vector<8x32xbf16>, vector<32x64xbf16>, vector<8x64xf32> -> vector<8x64xf32>
      %c0_51 = arith.constant 0 : index
      %c0_52 = arith.constant 0 : index
      %c0_53 = arith.constant 0 : index
      %108 = vector.load %arg13[%c0_51, %c0_52, %c0_53] : memref<1x1x64xf32, #tpu.memory_space<vmem>>, vector<1x1x64xf32>
      %109 = vector.shape_cast %108 : vector<1x1x64xf32> to vector<1x64xf32>
      %110 = vector.broadcast %109 : vector<1x64xf32> to vector<8x64xf32>
      %111 = arith.addf %107, %110 : vector<8x64xf32>
      %112 = arith.mulf %111, %111 : vector<8x64xf32>
      %113 = arith.mulf %111, %112 : vector<8x64xf32>
      %cst_54 = arith.constant 4.471500e-02 : f32
      %114 = vector.broadcast %cst_54 : f32 to vector<8x64xf32>
      %115 = arith.mulf %114, %113 : vector<8x64xf32>
      %116 = arith.addf %111, %115 : vector<8x64xf32>
      %cst_55 = arith.constant 0.797884583 : f32
      %117 = vector.broadcast %cst_55 : f32 to vector<8x64xf32>
      %118 = arith.mulf %117, %116 : vector<8x64xf32>
      %119 = math.tanh %118 : vector<8x64xf32>
      %cst_56 = arith.constant 1.000000e+00 : f32
      %120 = vector.broadcast %cst_56 : f32 to vector<8x64xf32>
      %121 = arith.addf %120, %119 : vector<8x64xf32>
      %cst_57 = arith.constant 5.000000e-01 : f32
      %122 = vector.broadcast %cst_57 : f32 to vector<8x64xf32>
      %123 = arith.mulf %122, %121 : vector<8x64xf32>
      %124 = arith.mulf %111, %123 : vector<8x64xf32>
      %125 = arith.truncf %124 : vector<8x64xf32> to vector<8x64xbf16>
      %c0_58 = arith.constant 0 : index
      %c0_59 = arith.constant 0 : index
      %c0_60 = arith.constant 0 : index
      %126 = vector.load %arg14[%c0_58, %c0_59, %c0_60] : memref<1x64x32xbf16, #tpu.memory_space<vmem>>, vector<1x64x32xbf16>
      %127 = vector.shape_cast %126 : vector<1x64x32xbf16> to vector<64x32xbf16>
      %cst_61 = arith.constant dense<0.000000e+00> : vector<8x32xf32>
      %128 = tpu.matmul %125, %127, %cst_61 {dimension_numbers = #tpu.dot_dimension_numbers<[1], [0], [0], [1], [0, 0, 1, 1], [], []>} : vector<8x64xbf16>, vector<64x32xbf16>, vector<8x32xf32> -> vector<8x32xf32>
      %c0_62 = arith.constant 0 : index
      %c0_63 = arith.constant 0 : index
      %c0_64 = arith.constant 0 : index
      %129 = vector.load %arg15[%c0_62, %c0_63, %c0_64] : memref<1x1x32xf32, #tpu.memory_space<vmem>>, vector<1x1x32xf32>
      %130 = vector.shape_cast %129 : vector<1x1x32xf32> to vector<1x32xf32>
      %131 = vector.broadcast %130 : vector<1x32xf32> to vector<8x32xf32>
      %132 = arith.addf %128, %131 : vector<8x32xf32>
      %133 = arith.addf %132, %97 : vector<8x32xf32>
      %c0_65 = arith.constant 0 : index
      %c0_66 = arith.constant 0 : index
      %c0_67 = arith.constant 0 : index
      %134 = vector.load %arg16[%c0_65, %c0_66, %c0_67] : memref<1x1x32xf32, #tpu.memory_space<vmem>>, vector<1x1x32xf32>
      %135 = vector.shape_cast %134 : vector<1x1x32xf32> to vector<1x32xf32>
      %c0_68 = arith.constant 0 : index
      %c0_69 = arith.constant 0 : index
      %c0_70 = arith.constant 0 : index
      %136 = vector.load %arg17[%c0_68, %c0_69, %c0_70] : memref<1x1x32xf32, #tpu.memory_space<vmem>>, vector<1x1x32xf32>
      %137 = vector.shape_cast %136 : vector<1x1x32xf32> to vector<1x32xf32>
      %cst_71 = arith.constant dense<0.000000e+00> : vector<8xf32>
      %138 = vector.multi_reduction <add>, %133, %cst_71 [1] : vector<8x32xf32> to vector<8xf32>
      %139 = vector.shape_cast %138 : vector<8xf32> to vector<8x1xf32>
      %cst_72 = arith.constant 3.200000e+01 : f32
      %140 = vector.broadcast %cst_72 : f32 to vector<8x1xf32>
      %141 = arith.divf %139, %140 : vector<8x1xf32>
      %142 = vector.broadcast %141 : vector<8x1xf32> to vector<8x32xf32>
      %143 = arith.subf %133, %142 : vector<8x32xf32>
      %144 = arith.mulf %143, %143 : vector<8x32xf32>
      %cst_73 = arith.constant dense<0.000000e+00> : vector<8xf32>
      %145 = vector.multi_reduction <add>, %144, %cst_73 [1] : vector<8x32xf32> to vector<8xf32>
      %146 = vector.shape_cast %145 : vector<8xf32> to vector<8x1xf32>
      %cst_74 = arith.constant 3.200000e+01 : f32
      %147 = vector.broadcast %cst_74 : f32 to vector<8x1xf32>
      %148 = arith.divf %146, %147 : vector<8x1xf32>
      %149 = vector.broadcast %141 : vector<8x1xf32> to vector<8x32xf32>
      %150 = arith.subf %133, %149 : vector<8x32xf32>
      %cst_75 = arith.constant 9.99999996E-13 : f32
      %151 = vector.broadcast %cst_75 : f32 to vector<8x1xf32>
      %152 = arith.addf %148, %151 : vector<8x1xf32>
      %153 = math.rsqrt %152 : vector<8x1xf32>
      %154 = vector.broadcast %153 : vector<8x1xf32> to vector<8x32xf32>
      %155 = arith.mulf %150, %154 : vector<8x32xf32>
      %156 = vector.broadcast %135 : vector<1x32xf32> to vector<8x32xf32>
      %157 = arith.mulf %155, %156 : vector<8x32xf32>
      %158 = vector.broadcast %137 : vector<1x32xf32> to vector<8x32xf32>
      %159 = arith.addf %157, %158 : vector<8x32xf32>
      %c0_76 = arith.constant 0 : index
      %c0_77 = arith.constant 0 : index
      %160 = vector.load %arg21[%c0_76, %c0_77] : memref<8x32xf32, #tpu.memory_space<vmem>>, vector<8x32xf32>
      tpu.vector_store %arg21[%c0_76, %c0_77], %159 {strides = array<i32>} : memref<8x32xf32, #tpu.memory_space<vmem>>, vector<8x32xf32>,
    } else {
    }
    %c1_i32_45 = arith.constant 1 : i32
    %101 = arith.cmpi eq, %arg1, %c1_i32_45 : i32
    %102 = arith.extui %101 : i1 to i32
    %c0_i32_46 = arith.constant 0 : i32
    %103 = arith.cmpi ne, %102, %c0_i32_46 : i32
    scf.if %103 {
      %104 = vector.extract_strided_slice %97 {offsets = [0, 0], sizes = [1, 32], strides = [1, 1]} : vector<8x32xf32> to vector<1x32xf32>
      %105 = arith.truncf %104 : vector<1x32xf32> to vector<1x32xbf16>
      %c0_47 = arith.constant 0 : index
      %c0_48 = arith.constant 0 : index
      %c0_49 = arith.constant 0 : index
      %106 = vector.load %arg12[%c0_47, %c0_48, %c0_49] : memref<1x32x64xbf16, #tpu.memory_space<vmem>>, vector<1x32x64xbf16>
      %107 = vector.shape_cast %106 : vector<1x32x64xbf16> to vector<32x64xbf16>
      %cst_50 = arith.constant dense<0.000000e+00> : vector<1x64xf32>
      %108 = tpu.matmul %105, %107, %cst_50 {dimension_numbers = #tpu.dot_dimension_numbers<[1], [0], [0], [1], [0, 0, 1, 1], [], []>} : vector<1x32xbf16>, vector<32x64xbf16>, vector<1x64xf32> -> vector<1x64xf32>
      %c0_51 = arith.constant 0 : index
      %c0_52 = arith.constant 0 : index
      %c0_53 = arith.constant 0 : index
      %109 = vector.load %arg13[%c0_51, %c0_52, %c0_53] : memref<1x1x64xf32, #tpu.memory_space<vmem>>, vector<1x1x64xf32>
      %110 = vector.shape_cast %109 : vector<1x1x64xf32> to vector<1x64xf32>
      %111 = arith.addf %108, %110 : vector<1x64xf32>
      %112 = arith.mulf %111, %111 : vector<1x64xf32>
      %113 = arith.mulf %111, %112 : vector<1x64xf32>
      %cst_54 = arith.constant 4.471500e-02 : f32
      %114 = vector.broadcast %cst_54 : f32 to vector<1x64xf32>
      %115 = arith.mulf %114, %113 : vector<1x64xf32>
      %116 = arith.addf %111, %115 : vector<1x64xf32>
      %cst_55 = arith.constant 0.797884583 : f32
      %117 = vector.broadcast %cst_55 : f32 to vector<1x64xf32>
      %118 = arith.mulf %117, %116 : vector<1x64xf32>
      %119 = math.tanh %118 : vector<1x64xf32>
      %cst_56 = arith.constant 1.000000e+00 : f32
      %120 = vector.broadcast %cst_56 : f32 to vector<1x64xf32>
      %121 = arith.addf %120, %119 : vector<1x64xf32>
      %cst_57 = arith.constant 5.000000e-01 : f32
      %122 = vector.broadcast %cst_57 : f32 to vector<1x64xf32>
      %123 = arith.mulf %122, %121 : vector<1x64xf32>
      %124 = arith.mulf %111, %123 : vector<1x64xf32>
      %125 = arith.truncf %124 : vector<1x64xf32> to vector<1x64xbf16>
      %c0_58 = arith.constant 0 : index
      %c0_59 = arith.constant 0 : index
      %c0_60 = arith.constant 0 : index
      %126 = vector.load %arg14[%c0_58, %c0_59, %c0_60] : memref<1x64x32xbf16, #tpu.memory_space<vmem>>, vector<1x64x32xbf16>
      %127 = vector.shape_cast %126 : vector<1x64x32xbf16> to vector<64x32xbf16>
      %cst_61 = arith.constant dense<0.000000e+00> : vector<1x32xf32>
      %128 = tpu.matmul %125, %127, %cst_61 {dimension_numbers = #tpu.dot_dimension_numbers<[1], [0], [0], [1], [0, 0, 1, 1], [], []>} : vector<1x64xbf16>, vector<64x32xbf16>, vector<1x32xf32> -> vector<1x32xf32>
      %c0_62 = arith.constant 0 : index
      %c0_63 = arith.constant 0 : index
      %c0_64 = arith.constant 0 : index
      %129 = vector.load %arg15[%c0_62, %c0_63, %c0_64] : memref<1x1x32xf32, #tpu.memory_space<vmem>>, vector<1x1x32xf32>
      %130 = vector.shape_cast %129 : vector<1x1x32xf32> to vector<1x32xf32>
      %131 = arith.addf %128, %130 : vector<1x32xf32>
      %132 = arith.addf %131, %104 : vector<1x32xf32>
      %c0_65 = arith.constant 0 : index
      %c0_66 = arith.constant 0 : index
      %c0_67 = arith.constant 0 : index
      %133 = vector.load %arg16[%c0_65, %c0_66, %c0_67] : memref<1x1x32xf32, #tpu.memory_space<vmem>>, vector<1x1x32xf32>
      %134 = vector.shape_cast %133 : vector<1x1x32xf32> to vector<1x32xf32>
      %c0_68 = arith.constant 0 : index
      %c0_69 = arith.constant 0 : index
      %c0_70 = arith.constant 0 : index
      %135 = vector.load %arg17[%c0_68, %c0_69, %c0_70] : memref<1x1x32xf32, #tpu.memory_space<vmem>>, vector<1x1x32xf32>
      %136 = vector.shape_cast %135 : vector<1x1x32xf32> to vector<1x32xf32>
      %cst_71 = arith.constant dense<0.000000e+00> : vector<1xf32>
      %137 = vector.multi_reduction <add>, %132, %cst_71 [1] : vector<1x32xf32> to vector<1xf32>
      %138 = vector.shape_cast %137 : vector<1xf32> to vector<1x1xf32>
      %cst_72 = arith.constant 3.200000e+01 : f32
      %139 = vector.broadcast %cst_72 : f32 to vector<1x1xf32>
      %140 = arith.divf %138, %139 : vector<1x1xf32>
      %141 = vector.broadcast %140 : vector<1x1xf32> to vector<1x32xf32>
      %142 = arith.subf %132, %141 : vector<1x32xf32>
      %143 = arith.mulf %142, %142 : vector<1x32xf32>
      %cst_73 = arith.constant dense<0.000000e+00> : vector<1xf32>
      %144 = vector.multi_reduction <add>, %143, %cst_73 [1] : vector<1x32xf32> to vector<1xf32>
      %145 = vector.shape_cast %144 : vector<1xf32> to vector<1x1xf32>
      %cst_74 = arith.constant 3.200000e+01 : f32
      %146 = vector.broadcast %cst_74 : f32 to vector<1x1xf32>
      %147 = arith.divf %145, %146 : vector<1x1xf32>
      %148 = vector.broadcast %140 : vector<1x1xf32> to vector<1x32xf32>
      %149 = arith.subf %132, %148 : vector<1x32xf32>
      %cst_75 = arith.constant 9.99999996E-13 : f32
      %150 = vector.broadcast %cst_75 : f32 to vector<1x1xf32>
      %151 = arith.addf %147, %150 : vector<1x1xf32>
      %152 = math.rsqrt %151 : vector<1x1xf32>
      %153 = vector.broadcast %152 : vector<1x1xf32> to vector<1x32xf32>
      %154 = arith.mulf %149, %153 : vector<1x32xf32>
      %155 = arith.mulf %154, %134 : vector<1x32xf32>
      %156 = arith.addf %155, %136 : vector<1x32xf32>
      %157 = arith.truncf %156 : vector<1x32xf32> to vector<1x32xbf16>
      %c0_76 = arith.constant 0 : index
      %c0_77 = arith.constant 0 : index
      %158 = vector.load %arg18[%c0_76, %c0_77] : memref<32x32xbf16, #tpu.memory_space<vmem>>, vector<32x32xbf16>
      %cst_78 = arith.constant dense<0.000000e+00> : vector<1x32xf32>
      %159 = tpu.matmul %157, %158, %cst_78 {dimension_numbers = #tpu.dot_dimension_numbers<[1], [0], [0], [1], [0, 0, 1, 1], [], []>} : vector<1x32xbf16>, vector<32x32xbf16>, vector<1x32xf32> -> vector<1x32xf32>
      %c0_79 = arith.constant 0 : index
      %c0_80 = arith.constant 0 : index
      %160 = vector.load %arg19[%c0_79, %c0_80] : memref<1x32xf32, #tpu.memory_space<vmem>>, vector<1x32xf32>
      %161 = arith.addf %159, %160 : vector<1x32xf32>
      %162 = math.tanh %161 : vector<1x32xf32>
      %c0_81 = arith.constant 0 : index
      %c0_82 = arith.constant 0 : index
      %c0_83 = arith.constant 0 : index
      %163 = vector.load %arg20[%c0_81, %c0_82, %c0_83] : memref<1x1x32xf32, #tpu.memory_space<vmem>>, vector<1x1x32xf32>
      %164 = vector.shape_cast %163 : vector<1x1x32xf32> to vector<1x32xf32>
      %165 = vector.shape_cast %162 : vector<1x32xf32> to vector<1x1x32xf32>
      tpu.vector_store %arg20[%c0_81, %c0_82, %c0_83], %165 {strides = array<i32>} : memref<1x1x32xf32, #tpu.memory_space<vmem>>, vector<1x1x32xf32>,
    } else {
    }
    return
  }
  func.func @transform_0(%arg0: i32, %arg1: i32) -> (i32, i32, i32) {
    %c0_i32 = arith.constant 0 : i32
    %c0_i32_0 = arith.constant 0 : i32
    %c0_i32_1 = arith.constant 0 : i32
    return %arg0, %c0_i32, %c0_i32_0 : i32, i32, i32
  }
  func.func @transform_1(%arg0: i32, %arg1: i32) -> (i32, i32, i32) {
    %c0_i32 = arith.constant 0 : i32
    %c0_i32_0 = arith.constant 0 : i32
    %c0_i32_1 = arith.constant 0 : i32
    return %arg0, %c0_i32, %c0_i32_0 : i32, i32, i32
  }
  func.func @transform_2(%arg0: i32, %arg1: i32) -> (i32, i32) {
    %c0_i32 = arith.constant 0 : i32
    %c0_i32_0 = arith.constant 0 : i32
    %c0_i32_1 = arith.constant 0 : i32
    return %c0_i32, %c0_i32_0 : i32, i32
  }
  func.func @transform_3(%arg0: i32, %arg1: i32) -> (i32, i32) {
    %c0_i32 = arith.constant 0 : i32
    %c0_i32_0 = arith.constant 0 : i32
    %c0_i32_1 = arith.constant 0 : i32
    return %c0_i32, %c0_i32_0 : i32, i32
  }
  func.func @transform_4(%arg0: i32, %arg1: i32) -> (i32, i32, i32) {
    %c0_i32 = arith.constant 0 : i32
    %c0_i32_0 = arith.constant 0 : i32
    %c0_i32_1 = arith.constant 0 : i32
    return %arg1, %c0_i32, %c0_i32_0 : i32, i32, i32
  }
  func.func @transform_5(%arg0: i32, %arg1: i32) -> (i32, i32, i32) {
    %c0_i32 = arith.constant 0 : i32
    %c0_i32_0 = arith.constant 0 : i32
    %c0_i32_1 = arith.constant 0 : i32
    return %arg1, %c0_i32, %c0_i32_0 : i32, i32, i32
  }
  func.func @transform_6(%arg0: i32, %arg1: i32) -> (i32, i32, i32) {
    %c0_i32 = arith.constant 0 : i32
    %c0_i32_0 = arith.constant 0 : i32
    %c0_i32_1 = arith.constant 0 : i32
    return %arg1, %c0_i32, %c0_i32_0 : i32, i32, i32
  }
  func.func @transform_7(%arg0: i32, %arg1: i32) -> (i32, i32, i32) {
    %c0_i32 = arith.constant 0 : i32
    %c0_i32_0 = arith.constant 0 : i32
    %c0_i32_1 = arith.constant 0 : i32
    return %arg1, %c0_i32, %c0_i32_0 : i32, i32, i32
  }
  func.func @transform_8(%arg0: i32, %arg1: i32) -> (i32, i32, i32) {
    %c0_i32 = arith.constant 0 : i32
    %c0_i32_0 = arith.constant 0 : i32
    %c0_i32_1 = arith.constant 0 : i32
    return %arg1, %c0_i32, %c0_i32_0 : i32, i32, i32
  }
  func.func @transform_9(%arg0: i32, %arg1: i32) -> (i32, i32, i32) {
    %c0_i32 = arith.constant 0 : i32
    %c0_i32_0 = arith.constant 0 : i32
    %c0_i32_1 = arith.constant 0 : i32
    return %arg1, %c0_i32, %c0_i32_0 : i32, i32, i32
  }
  func.func @transform_10(%arg0: i32, %arg1: i32) -> (i32, i32, i32) {
    %c0_i32 = arith.constant 0 : i32
    %c0_i32_0 = arith.constant 0 : i32
    %c0_i32_1 = arith.constant 0 : i32
    return %arg1, %c0_i32, %c0_i32_0 : i32, i32, i32
  }
  func.func @transform_11(%arg0: i32, %arg1: i32) -> (i32, i32, i32) {
    %c0_i32 = arith.constant 0 : i32
    %c0_i32_0 = arith.constant 0 : i32
    %c0_i32_1 = arith.constant 0 : i32
    return %arg1, %c0_i32, %c0_i32_0 : i32, i32, i32
  }
  func.func @transform_12(%arg0: i32, %arg1: i32) -> (i32, i32, i32) {
    %c0_i32 = arith.constant 0 : i32
    %c0_i32_0 = arith.constant 0 : i32
    %c0_i32_1 = arith.constant 0 : i32
    return %arg1, %c0_i32, %c0_i32_0 : i32, i32, i32
  }
  func.func @transform_13(%arg0: i32, %arg1: i32) -> (i32, i32, i32) {
    %c0_i32 = arith.constant 0 : i32
    %c0_i32_0 = arith.constant 0 : i32
    %c0_i32_1 = arith.constant 0 : i32
    return %arg1, %c0_i32, %c0_i32_0 : i32, i32, i32
  }
  func.func @transform_14(%arg0: i32, %arg1: i32) -> (i32, i32, i32) {
    %c0_i32 = arith.constant 0 : i32
    %c0_i32_0 = arith.constant 0 : i32
    %c0_i32_1 = arith.constant 0 : i32
    return %arg1, %c0_i32, %c0_i32_0 : i32, i32, i32
  }
  func.func @transform_15(%arg0: i32, %arg1: i32) -> (i32, i32, i32) {
    %c0_i32 = arith.constant 0 : i32
    %c0_i32_0 = arith.constant 0 : i32
    %c0_i32_1 = arith.constant 0 : i32
    return %arg1, %c0_i32, %c0_i32_0 : i32, i32, i32
  }
  func.func @transform_16(%arg0: i32, %arg1: i32) -> (i32, i32) {
    %c0_i32 = arith.constant 0 : i32
    %c0_i32_0 = arith.constant 0 : i32
    %c0_i32_1 = arith.constant 0 : i32
    return %c0_i32, %c0_i32_0 : i32, i32
  }
  func.func @transform_17(%arg0: i32, %arg1: i32) -> (i32, i32) {
    %c0_i32 = arith.constant 0 : i32
    %c0_i32_0 = arith.constant 0 : i32
    %c0_i32_1 = arith.constant 0 : i32
    return %c0_i32, %c0_i32_0 : i32, i32
  }
  func.func @transform_18(%arg0: i32, %arg1: i32) -> (i32, i32, i32) {
    %c0_i32 = arith.constant 0 : i32
    %c0_i32_0 = arith.constant 0 : i32
    %c0_i32_1 = arith.constant 0 : i32
    return %arg0, %c0_i32, %c0_i32_0 : i32, i32, i32
  }
}

</mosaic_0001>

<bundles_post_ra>
// kernel: text_model_forward.1
= control target key start
LH: loop header
LB: loop body
LE: loop exit
PB: predicated region body
PF: predicated region fallthrough
CT: control target
= control target key end

     0   :  { %s2340_s0 = inlined_call_operand.vmem [shape: f32[2,8,32], index: 0, kind: input, shape index: {}]   ;;  %s2341_s1 = inlined_call_operand.vmem [shape: f32[2,1,8], index: 1, kind: input, shape index: {}]   ;;  %s2342_s2 = inlined_call_operand.vmem [shape: f32[1,32], index: 2, kind: input, shape index: {}]   ;;  %s2343_s3 = inlined_call_operand.vmem [shape: f32[1,32], index: 3, kind: input, shape index: {}]   ;;  %s2344_s4 = inlined_call_operand.vmem [shape: bf16[2,32,96], index: 4, kind: input, shape index: {}]   ;;  %s2345_s5 = inlined_call_operand.vmem [shape: f32[2,1,96], index: 5, kind: input, shape index: {}]   ;;  %s2346_s6 = inlined_call_operand.vmem [shape: bf16[2,32,32], index: 6, kind: input, shape index: {}]   ;;  %s2347_s7 = inlined_call_operand.vmem [shape: f32[2,1,32], index: 7, kind: input, shape index: {}]   ;;  %s2348_s8 = inlined_call_operand.vmem [shape: f32[2,1,32], index: 8, kind: input, shape index: {}]   ;;  %s2349_s9 = inlined_call_operand.vmem [shape: f32[2,1,32], index: 9, kind: input, shape index: {}]   ;;  %s2350_s10 = inlined_call_operand.vmem [shape: bf16[2,32,64], index: 10, kind: input, shape index: {}]   ;;  %s2351_s11 = inlined_call_operand.vmem [shape: f32[2,1,64], index: 11, kind: input, shape index: {}]   ;;  %s2352_s12 = inlined_call_operand.vmem [shape: bf16[2,64,32], index: 12, kind: input, shape index: {}]   ;;  %s2353_s13 = inlined_call_operand.vmem [shape: f32[2,1,32], index: 13, kind: input, shape index: {}]   ;;  %s2354_s14 = inlined_call_operand.vmem [shape: f32[2,1,32], index: 14, kind: input, shape index: {}]   ;;  %s2355_s15 = inlined_call_operand.vmem [shape: f32[2,1,32], index: 15, kind: input, shape index: {}]   ;;  %s2356_s16 = inlined_call_operand.vmem [shape: bf16[32,32], index: 16, kind: input, shape index: {}]   ;;  %s2357_s17 = inlined_call_operand.vmem [shape: f32[1,32], index: 17, kind: input, shape index: {}]   ;;  %s2358_s18 = inlined_call_operand.hbm [shape: f32[2,1,32], index: 18, kind: output, shape index: {}]  }
   0x1   :  { %2373 = sst [smem:[#allocation19_spill]] %s2340_s0 }
   0x2   :  { %2374 = sst [smem:[#allocation20_spill]] %s2341_s1 }
   0x3   :  { %2375 = sst [smem:[#allocation21_spill]] %s2342_s2 }
   0x4   :  { %2376 = sst [smem:[#allocation22_spill]] %s2343_s3 }
   0x5   :  { %2377 = sst [smem:[#allocation23_spill]] %s2344_s4 }
   0x6   :  { %2378 = sst [smem:[#allocation24_spill]] %s2346_s6 }
   0x7   :  { %2379 = sst [smem:[#allocation25_spill]] %s2350_s10 }
   0x8   :  { %2380 = sst [smem:[#allocation26_spill]] %s2351_s11 }
   0x9   :  { %2381 = sst [smem:[#allocation27_spill]] %s2354_s14 }
   0xa   :  { %2382 = sst [smem:[#allocation28_spill]] %s2355_s15 }
   0xb   :  { %2383 = sst [smem:[#allocation29_spill]] %s2356_s16 }
   0xc   :  { %2384 = sst [smem:[#allocation30_spill]] %s2357_s17 }
   0xd   :  { %2385 = sst [smem:[#allocation31_spill]] %s2358_s18 }
   0xe   :  { %23 = vsyncpa [#allocation5], 0 }
   0xf   :  { %25 = vsyncpa [#allocation5 + $0x1], 0  ;;  %s2027_s27 = smov 0   ;;  %s2029_s28 = smov 0  }
  0x10   :  { %s2031_s29 = smov 0   ;;  %s2033_s30 = smov 0  }
  0x11   :  { %s2035_s0 = smov 0   ;;  %s2037_s19 = smov 0  }
  0x12   :  { %s2039_s1 = smov 0   ;;  %s2041_s20 = smov 0  }
  0x13 LB: > { %2386 = sst [smem:[#allocation7_spill]] %s1894_s27  ;;  %s1588_s21 = sadd.s32 4294967295, %s1922_s20   ;;  %s1922_s20 = sphi %s2041_s20, %s31_s20   ;;  %s1918_s1 = sphi %s2039_s1, %s2435_s1   ;;  %s1914_s19 = sphi %s2037_s19, %s2434_s19   ;;  %s1910_s0 = sphi %s2035_s0, %s2433_s0   ;;  %s1906_s30 = sphi %s2033_s30, %s2432_s30   ;;  %s1902_s29 = sphi %s2031_s29, %s2431_s29   ;;  %s1898_s28 = sphi %s2029_s28, %s2437_s28   ;;  %s1894_s27 = sphi %s2027_s27, %s2436_s27  }
  0x14   : > { %2387 = sst [smem:[#allocation8_spill]] %s1902_s29  ;;  %s1589_s22 = sadd.s32 4294967294, %s1922_s20  }
  0x15   : > { %2388 = sst [smem:[#allocation9_spill]] %s1906_s30  ;;  %s40_s2 = sadd.s32 1, %s1914_s19 }
  0x16   : > { %2389 = sst [smem:[#allocation10_spill]] %s1910_s0  ;;  %p41_p0 = scmp.ge.s32.totalorder %s40_s2, 2 }
  0x17   : > { %2390 = sst [smem:[#allocation11_spill]] %s1914_s19  ;;  %s43_s23 = sadd.s32 1, %s1918_s1 }
  0x18   : > { %2391 = sst [smem:[#allocation12_spill]] %s1918_s1  ;;  %p508_p1 = scmp.ne.s32.totalorder %s1902_s29, %s1898_s28 }
  0x19   : > { %2392 = sst [smem:[#allocation13_spill]] %s1922_s20  ;;  %p509_p2 = scmp.eq.s32.totalorder %s1588_s21, 3 }
  0x1a   : > { %s2439_s2 = smov (%p41_p0, %s40_s2), 0  ;;  %s2441_s23 = smov (!%p41_p0, %s43_s23), %s1918_s1 }
  0x1b   : > { %2393 = sst [smem:[#allocation14_spill]] %s2439_s2  ;;  %p2076_p3 = por %p509_p2, %p508_p1 }
  0x1c   : > { %p514_p4 = scmp.ne.s32.totalorder %s1898_s28, %s1894_s27  ;;  %p45_p5 = scmp.ge.s32.totalorder %s2441_s23, 2 }
  0x1d   : > { %s2394_s24 = scalar_select %p2076_p3, 1, 0 }
  0x1e   : > { %p515_p6 = scmp.eq.s32.totalorder %s1589_s22, 3  ;;  %p1592_p7 = scmp.ge.s32.totalorder %s1922_s20, 1 }
  0x1f   : > { %2395 = sst [smem:[#allocation15_spill]] %s2394_s24  ;;  %p638_p8 = scmp.lt.s32.totalorder %s1922_s20, 5 }
  0x20   : > { %s2443_s23 = smov (%p45_p5, %s2441_s23), 0  ;;  %p2086_p9 = por %p515_p6, %p514_p4 }
  0x21   : > { %2396 = sst [smem:[#allocation16_spill]] %s2443_s23  ;;  %p639_p10 = pnand %p1592_p7, %p638_p8 }
  0x22   : > { %s2397_s25 = scalar_select %p2086_p9, 1, 0 }
  0x23   : > { %s495_s26 = ssub.s32 %s1918_s1, %s2443_s23  ;;  %s498_s21 = sadd.s32 1, %s1902_s29 }
  0x24   : > { %2398 = sst [smem:[#allocation17_spill]] %s2397_s25  ;;  %p496_p11 = scmp.eq.s32.totalorder %s495_s26, 0 }
  0x25   : > { %642 = sbr.rel (%p639_p10) target bundleno = 2922 (0xb6a), region = 92  ;;  %p737_p12 = scmp.lt.s32.totalorder (!%p639_p10), %s1910_s0, 1 }
  0x26   : > { %s2094_s2 = scalar_select %p496_p11, %s1902_s29, %s498_s21  }
  0x27   : > { %p744_p13 = scmp.lt.s32.totalorder (!%p639_p10), %s1906_s30, 1  ;;  %s2401_s27 = sld [smem:[#allocation19_spill]] (!%p639_p10) }
  0x28   : > { %2399 = sst [smem:[#allocation18_spill]] %s2094_s2 }
  0x29   : > { %s2402_s4 = sld [smem:[#allocation23_spill]] (!%p639_p10) }
  0x2a   : > { %s2100_s19 = scalar_select %p737_p12, %s1910_s0, 1 }
  0x2b   : > { %s2103_s25 = scalar_select %p744_p13, %s1906_s30, 1 }
  0x2c   : > { %s1593_s26 = sshll.u32 %s2100_s19, 3  ;;  %s2403_s6 = sld [smem:[#allocation24_spill]] }
  0x2d   : > { %s740_s20 = scalar_lea.vmem %s2401_s27, %s1593_s26  ;;  %s1691_s24 = sshll.u32 %s2103_s25, 4 }
  0x2e   : > { %s2404_s10 = sld [smem:[#allocation25_spill]]  ;;  %s1694_s23 = sshll.u32 %s2103_s25, 5 }
  0x2f   : > { %s2117_s17 = scalar_lea.vmem %s2402_s4, %s1691_s24  ;;  %s2405_s11 = sld [smem:[#allocation26_spill]] }
  0x30   : > { %s2156_s27 = scalar_lea.vmem %s2353_s13, %s2103_s25  ;;  %s2161_s18 = scalar_lea.vmem %s2352_s12, %s1694_s23 }
  0x31   : > { %s2407_s15 = sld [smem:[#allocation28_spill]] }
  0x32   : > { %s2126_s22 = scalar_lea.vmem %s2403_s6, %s1691_s24  ;;  %s2409_s29 = sld [smem:[#allocation9_spill]] }
  0x34   : > { %s2143_s16 = scalar_lea.vmem %s2404_s10, %s1691_s24  ;;  %s2406_s24 = sld [smem:[#allocation27_spill]] }
  0x35   : > { %s2149_s30 = scalar_lea.vmem %s2405_s11, %s2103_s25  ;;  %s2408_s10 = sand.u32 1, %s1898_s28  }
  0x36   : > { %s2177_s11 = scalar_lea.vmem [#allocation4], %s2408_s10 }
  0x37   : > { %s2173_s6 = scalar_lea.vmem %s2407_s15, %s2103_s25 }
  0x38   : > { %p1602_p0 = scmp.ne.s32.totalorder %s2409_s29, 0 }
  0x39   : > { %s2411_s21 = sld [smem:[#allocation22_spill]] (!%p1602_p0) }
  0x3a   : > { %s2167_s3 = scalar_lea.vmem %s2406_s24, %s2103_s25  ;;  %792 = sbr.rel (%p1602_p0) target bundleno = 333 (0x14d), region = 96 }
  0x3f   : > { %v793_v0 = vld [vmem:[%s740_s20] sm:$0xff]  ;;  %vm796_vm0 = vcmask 261120   ;;  %v1924_v2 = vmov 32.0   ;;  %s2410_s20 = sld [smem:[#allocation21_spill]] }
  0x40   : > { %v797_v1 = vsel %vm796_vm0, %v793_v0, 0.0  ;;  %1794 = vrcp.f32 %v1924_v2  ;;  %v1793_v25 = vld [vmem:[%s2411_s21] ss:$0 sm:$0xff] }
  0x41   : > { %798 = vadd.xlane.f32.xlu0 %v797_v1 }
  0x45   : > { %v1792_v23 = vld [vmem:[%s2410_s20] ss:$0 sm:$0xff] }
  0x46   : > { %v1795_v3 = vpop.eup %1794 }
  0x47   : > { %v801_v4 = vmul.f32 32.0, %v1795_v3  ;;  %vm805_vm1 = vweird.f32 %v1795_v3 }
  0x49   : > { %v802_v5 = vsub.f32 1.0, %v801_v4 }
  0x4b   : > { %v803_v6 = vmul.f32 %v1795_v3, %v802_v5 }
  0x4d   : > { %v804_v7 = vadd.f32 %v1795_v3, %v803_v6 }
  0x4f   : > { %v806_v8 = vsel %vm805_vm1, %v1795_v3, %v804_v7 }
  0xb4   : > { %v799_v9 = vpop.xlane.xlu0 %798 }
  0xb5   : > { %v807_v10 = vmul.f32 %v806_v8, %v799_v9 }
  0xb7   : > { %v808_v11 = vsub.f32 %v793_v0, %v807_v10 }
  0xb9   : > { %v809_v12 = vmul.f32 %v808_v11, %v808_v11 }
  0xbb   : > { %v810_v13 = vsel %vm796_vm0, %v809_v12, 0.0 }
  0xbc   : > { %811 = vadd.xlane.f32.xlu0 %v810_v13 }
 0x12f   : > { %v812_v14 = vpop.xlane.xlu0 %811 }
 0x130   : > { %v813_v15 = vmul.f32 %v812_v14, %v806_v8 }
 0x132   : > { %v814_v16 = vadd.f32 1e-12, %v813_v15 }
 0x134   : > { %1796 = vrsqrt.f32 %v814_v16  ;;  %vm821_vm3 = vweird.f32 %v814_v16 }
 0x13a   : > { %v1797_v17 = vpop.eup %1796 }
 0x13b   : > { %v816_v18 = vmul.f32 %v1797_v17, %v814_v16  ;;  %vm822_vm2 = vweird.f32 %v1797_v17 }
 0x13c   : > { %vm823_vm4 = vmor %vm821_vm3, %vm822_vm2 }
 0x13d   : > { %v817_v19 = vmul.f32 %v1797_v17, %v816_v18 }
 0x13f   : > { %v818_v20 = vmul.f32 0.5, %v817_v19 }
 0x141   : > { %v819_v21 = vsub.f32 1.5, %v818_v20 }
 0x143   : > { %v820_v22 = vmul.f32 %v1797_v17, %v819_v21 }
 0x145   : > { %v824_v24 = vsel %vm823_vm4, %v1797_v17, %v820_v22 }
 0x146   : > { %v825_v26 = vmul.f32 %v824_v24, %v808_v11 }
 0x148   : > { %v829_v27 = vmul.f32 %v1792_v23, %v825_v26 }
 0x14a   : > { %v833_v28 = vadd.f32 %v1793_v25, %v829_v27 }
 0x14c   : > { %834 = vst.msk [vmem:[#allocation2] sm:$0xff] %vm796_vm0, %v833_v28 }
 0x14d PF: > { %v1696_v29 = vld [vmem:[%s2117_s17 + $0x8] sm:$0xff]  ;;  %v1695_v30 = vld [vmem:[%s2117_s17] sm:$0xff]  ;;  %vm857_vm5 = vcmask 261120   ;;  %s2412_s4 = scalar_lea.vmem %s2345_s5, %s2103_s25  ;;  %s1925_s24 = smov 112   ;;  %vm884_vm6 = vcmask 130048   ;;  %vm922_vm7 = vcmask 1043456  }
 0x14e   : > { %867 = vmatpush.bf16.msra.mxu0 %v1696_v29  ;;  %v1798_v33 = vld [vmem:[%s2412_s4] ss:$0 sm:$0xff]  ;;  %s1926_s17 = smov 96   ;;  %s1927_s14 = smov 80   ;;  %vm904_vm8 = vcmask 64512   ;;  %v1698_v13 = vld [vmem:[%s2126_s22 + $0x8] sm:$0xff] }
 0x14f   : > { %s1928_s15 = smov 64   ;;  %s1929_s29 = smov 48   ;;  %v1697_v18 = vld [vmem:[%s2126_s22] sm:$0xff]  ;;  %vm1000_vm9 = vcmask 261248   ;;  %v1931_v28 = vmov 32.0  }
 0x150   : > { %s2413_s20 = sld [smem:[#allocation20_spill]]  ;;  %s2415_s2 = scalar_lea.vmem %s2347_s7, %s2103_s25 }
 0x151   : > { %v1799_v22 = vld [vmem:[%s2415_s2] ss:$0 sm:$0xff]  ;;  %s2416_s4 = scalar_lea.vmem %s2348_s8, %s2103_s25 }
 0x152   : > { %868 = vmatpush.bf16.msra.mxu0 %v1695_v30 }
 0x153   : > { %v2191_v31 = vld [vmem:[#allocation2] sm:$0xff] }
 0x154   : > { %v836_v32 = vpack.c.bf16 %v2191_v31, %v2191_v31 }
 0x156   : > { %1611 = vmatmul.msk.bf16.vlgmr.msra.gmra.mxu0 %vm857_vm5, %v836_v32  ;;  %s2414_s26 = scalar_lea.vmem %s2413_s20, %s2100_s19  ;;  %s1930_s19 = smov 16  }
 0x157   : > { %v874_v47 = vld [vmem:[%s2414_s26] sm:$0x1]  ;;  %1033 = vmatpush.bf16.msrb.mxu0 %v1698_v13 }
 0x158   : > { %v1612_v48 = vadd.f32 -1.0, %v874_v47 }
 0x15a   : > { %v876_v49 = vmul.f32 1e+09, %v1612_v48 }
 0x15b   : > { %1034 = vmatpush.bf16.msrb.mxu0 %v1697_v18 }
 0x15c   : > { %v879_v50 = vperm.slane %v876_v49, 0  ;;  %v1800_v49 = vld [vmem:[%s2416_s4] ss:$0 sm:$0xff] }
 0x1d3   : > { %v870_v34 = vpop.f32.mrf.mxu0 }
 0x1d4   : > { %v871_v35 = vadd.f32 %v1798_v33, %v870_v34 }
 0x1d6   : > { %v877_v36 = vpack.c.bf16 %v871_v35, %v871_v35 }
 0x1d8   : > { %940 = vrot.lane.b32.xlu1 %v877_v36, %s1925_s24  ;;  %882 = vrot.lane.b32.xlu0 %v877_v36, %s1926_s17 }
 0x1db   : > { %v872_v37 = vpop.f32.mrf.mxu0 }
 0x1e0   : > { %942 = vrot.lane.b32.xlu0 %v877_v36, %s1927_s14  ;;  %s2417_s14 = scalar_lea.vmem %s2349_s9, %s2103_s25 }
 0x1e8   : > { %917 = vrot.lane.b32.xlu0 %v877_v36, %s1928_s15  ;;  %s2418_s15 = sld [smem:[#allocation9_spill]] }
 0x1ee   : > { %p1626_p1 = scmp.ge.s32.totalorder %s2418_s15, 1 }
 0x1f0   : > { %975 = vrot.lane.b32.xlu0 %v877_v36, %s1929_s29 }
 0x24a   : > { %v883_v38 = vpop.permute.xlu0 %882  ;;  %v941_v42 = vpop.permute.xlu1 %940 }
 0x24b   : > { %v889_v39 = vsel %vm884_vm6, %v883_v38, 0 }
 0x24c   : > { %898 = vmatpush.bf16.xpose.msra.mxu1 %v889_v39 }
 0x252   : > { %v943_v40 = vpop.permute.xlu0 %942 }
 0x253   : > { %1613 = vmatmul.msk.bf16.vlgmr.msra.gmra.mxu1 %vm884_vm6, %v877_v36  ;;  %v948_v41 = vsel %vm884_vm6, %v943_v40, 0 }
 0x254   : > { %957 = vmatpush.bf16.xpose.msra.mxu3 %v948_v41 }
 0x25a   : > { %v918_v43 = vpop.permute.xlu0 %917 }
 0x25b   : > { %1615 = vmatmul.msk.bf16.vlgmr.msra.gmra.mxu3 %vm884_vm6, %v941_v42  ;;  %v924_v44 = vsel %vm922_vm7, %v918_v43, 0 }
 0x25c   : > { %933 = vmatpush.bf16.msra.mxu2 %v924_v44 }
 0x262   : > { %v976_v45 = vpop.permute.xlu0 %975 }
 0x263   : > { %v981_v46 = vsel %vm922_vm7, %v976_v45, 0 }
 0x264   : > { %990 = vmatpush.bf16.msrb.mxu2 %v981_v46 }
 0x2d0   : > { %v900_v51 = vpop.f32.mrf.mxu1 }
 0x2d1   : > { %v901_v52 = vadd.f32 %v900_v51, %v879_v50  ;;  %v1801_v51 = vld [vmem:[%s2417_s14] ss:$0 sm:$0xff] }
 0x2d3   : > { %v905_v53 = vsel %vm904_vm8, %v901_v52, -inf }
 0x2d4   : > { %906 = vmax.xlane.f32.xlu1 %v905_v53 }
 0x2d8   : > { %v902_v54 = vpop.f32.mrf.mxu1 }
 0x2de   : > { %v959_v55 = vpop.f32.mrf.mxu3 }
 0x2df   : > { %v960_v56 = vadd.f32 %v959_v55, %v879_v50 }
 0x2e1   : > { %v963_v57 = vsel %vm904_vm8, %v960_v56, -inf }
 0x2e2   : > { %964 = vmax.xlane.f32.xlu2 %v963_v57 }
 0x2e6   : > { %v961_v58 = vpop.f32.mrf.mxu3 }
 0x347   : > { %v907_v59 = vpop.xlane.xlu1 %906 }
 0x348   : > { %v908_v60 = vsub.f32 %v901_v52, %v907_v59 }
 0x34a   : > { %v909_v61 = vmul.f32 1.442695, %v908_v60 }
 0x34c   : > { %1802 = vpow2.f32 %v909_v61 }
 0x352   : > { %v1803_v62 = vpop.eup %1802 }
 0x353   : > { %v911_v63 = vsel %vm904_vm8, %v1803_v62, 0.0 }
 0x354   : > { %912 = vadd.xlane.f32.xlu2 %v911_v63 }
 0x355   : > { %v965_v0 = vpop.xlane.xlu2 %964 }
 0x356   : > { %v966_v1 = vsub.f32 %v960_v56, %v965_v0 }
 0x358   : > { %v967_v2 = vmul.f32 1.442695, %v966_v1 }
 0x35a   : > { %1804 = vpow2.f32 %v967_v2 }
 0x360   : > { %v1805_v3 = vpop.eup %1804 }
 0x361   : > { %v969_v4 = vsel %vm904_vm8, %v1805_v3, 0.0 }
 0x362   : > { %970 = vadd.xlane.f32.xlu2 %v969_v4 }
 0x3c7   : > { %v913_v5 = vpop.xlane.xlu2 %912 }
 0x3c8   : > { %1806 = vrcp.f32 %v913_v5 }
 0x3ce   : > { %v1807_v6 = vpop.eup %1806 }
 0x3cf   : > { %v915_v7 = vmul.f32 %v1807_v6, %v1803_v62 }
 0x3d1   : > { %v916_v8 = vpack.c.bf16 %v915_v7, %v915_v7 }
 0x3d3   : > { %1614 = vmatmul.msk.bf16.vlgmr.msra.gmra.mxu2 %vm904_vm8, %v916_v8 }
 0x3d5   : > { %v971_v9 = vpop.xlane.xlu2 %970 }
 0x3d6   : > { %1808 = vrcp.f32 %v971_v9 }
 0x3d7   : > { %1810 = vrcp.f32 %v1931_v28 }
 0x3dc   : > { %v1809_v10 = vpop.eup %1808 }
 0x3dd   : > { %v973_v11 = vmul.f32 %v1809_v10, %v1805_v3  ;;  %v1811_v29 = vpop.eup %1810 }
 0x3de   : > { %v1047_v30 = vmul.f32 32.0, %v1811_v29  ;;  %vm1051_vm10 = vweird.f32 %v1811_v29 }
 0x3df   : > { %v974_v12 = vpack.c.bf16 %v973_v11, %v973_v11 }
 0x3e0   : > { %v1048_v32 = vsub.f32 1.0, %v1047_v30 }
 0x3e2   : > { %v1049_v33 = vmul.f32 %v1811_v29, %v1048_v32 }
 0x3e3   : > { %1616 = vmatmul.msk.bf16.vlgmr.msrb.gmra.mxu2 %vm904_vm8, %v974_v12 }
 0x3e4   : > { %v1050_v34 = vadd.f32 %v1811_v29, %v1049_v33 }
 0x3e6   : > { %v2227_v35 = vsel %vm1051_vm10, %v1811_v29, %v1050_v34 }
 0x456   : > { %v935_v14 = vpop.f32.mrf.mxu2 }
 0x457   : > { %939 = vst.msk [vmem:[#allocation3] sm:$0xff] %vm884_vm6, %v935_v14 }
 0x45e   : > { %v937_v15 = vpop.f32.mrf.mxu2 }
 0x466   : > { %v992_v16 = vpop.f32.mrf.mxu2 }
 0x467   : > { %997 = vrot.lane.b32.xlu2 %v992_v16, %s1930_s19 }
 0x46e   : > { %v994_v17 = vpop.f32.mrf.mxu2 }
 0x4c1   : > { %v998_v19 = vpop.permute.xlu2 %997 }
 0x4c2   : > { %1001 = vst.msk [vmem:[#allocation3] sm:$0xff] %vm1000_vm9, %v998_v19 }
 0x4c9   : > { %v1002_v20 = vld [vmem:[#allocation3] sm:$0xff] }
 0x4ca   : > { %v1003_v21 = vpack.c.bf16 %v1002_v20, %v1002_v20 }
 0x4cc   : > { %1625 = vmatmul.msk.bf16.vlgmr.msrb.gmra.mxu0 %vm857_vm5, %v1003_v21 }
 0x549   : > { %v1036_v23 = vpop.f32.mrf.mxu0 }
 0x54a   : > { %v1037_v24 = vadd.f32 %v1799_v22, %v1036_v23 }
 0x54c   : > { %v1040_v25 = vadd.f32 %v1037_v24, %v2191_v31 }
 0x54e   : > { %v1043_v26 = vsel %vm857_vm5, %v1040_v25, 0.0 }
 0x54f   : > { %1044 = vadd.xlane.f32.xlu0 %v1043_v26 }
 0x551   : > { %v1038_v27 = vpop.f32.mrf.mxu0 }
 0x5c2   : > { %v1045_v36 = vpop.xlane.xlu0 %1044 }
 0x5c3   : > { %v1053_v37 = vmul.f32 %v2227_v35, %v1045_v36 }
 0x5c5   : > { %v1054_v38 = vsub.f32 %v1040_v25, %v1053_v37 }
 0x5c7   : > { %v1055_v31 = vmul.f32 %v1054_v38, %v1054_v38 }
 0x5c9   : > { %v1056_v39 = vsel %vm857_vm5, %v1055_v31, 0.0 }
 0x5ca   : > { %1057 = vadd.xlane.f32.xlu2 %v1056_v39 }
 0x63d   : > { %v1058_v40 = vpop.xlane.xlu2 %1057 }
 0x63e   : > { %v1059_v41 = vmul.f32 %v1058_v40, %v2227_v35 }
 0x640   : > { %v1060_v42 = vadd.f32 1e-12, %v1059_v41 }
 0x642   : > { %1812 = vrsqrt.f32 %v1060_v42  ;;  %vm1067_vm12 = vweird.f32 %v1060_v42 }
 0x648   : > { %v1813_v43 = vpop.eup %1812 }
 0x649   : > { %v1062_v44 = vmul.f32 %v1813_v43, %v1060_v42  ;;  %vm1068_vm11 = vweird.f32 %v1813_v43 }
 0x64a   : > { %vm1069_vm13 = vmor %vm1067_vm12, %vm1068_vm11 }
 0x64b   : > { %v1063_v45 = vmul.f32 %v1813_v43, %v1062_v44 }
 0x64d   : > { %v1064_v46 = vmul.f32 0.5, %v1063_v45 }
 0x64f   : > { %v1065_v47 = vsub.f32 1.5, %v1064_v46 }
 0x651   : > { %v1066_v48 = vmul.f32 %v1813_v43, %v1065_v47 }
 0x653   : > { %v1070_v50 = vsel %vm1069_vm13, %v1813_v43, %v1066_v48 }
 0x654   : > { %v1071_v52 = vmul.f32 %v1070_v50, %v1054_v38  ;;  %1083 = sbr.rel (%p1626_p1) target bundleno = 2185 (0x889), region = 100 }
 0x656   : > { %v1075_v53 = vmul.f32 %v1800_v49, %v1071_v52 }
 0x658   : > { %v2242_v54 = vadd.f32 %v1801_v51, %v1075_v53 }
 0x659   : > { %v1700_v55 = vld [vmem:[%s2143_s16 + $0x8] sm:$0xff]  ;;  %v1699_v56 = vld [vmem:[%s2143_s16] sm:$0xff]  ;;  %v1704_v58 = vld [vmem:[%s2161_s18 + $0x18] sm:$0xff]  ;;  %vm1167_vm14 = vcmask 523264  }
 0x65a   : > { %1114 = vmatpush.bf16.msra.mxu0 %v1700_v55  ;;  %v1084_v57 = vpack.c.bf16 %v2242_v54, %v2242_v54  ;;  %1175 = vmatpush.bf16.msra.mxu1 %v1704_v58  ;;  %v1703_v59 = vld [vmem:[%s2161_s18 + $0x10] sm:$0xff]  ;;  %v1702_v60 = vld [vmem:[%s2161_s18 + $0x8] sm:$0xff]  ;;  %v1701_v61 = vld [vmem:[%s2161_s18] sm:$0xff] }
 0x65b   : > { %v1814_v62 = vld [vmem:[%s2149_s30] ss:$0 sm:$0xff] }
 0x65c   : > { %v1815_v12 = vld [vmem:[%s2156_s27] ss:$0 sm:$0xff] }
 0x65d   : > { %v1816_v33 = vld [vmem:[%s2167_s3] ss:$0 sm:$0xff] }
 0x65e   : > { %1115 = vmatpush.bf16.msra.mxu0 %v1699_v56  ;;  %1176 = vmatpush.bf16.msra.mxu1 %v1703_v59  ;;  %v1817_v36 = vld [vmem:[%s2173_s6] ss:$0 sm:$0xff] }
 0x661   : > { %1635 = vmatmul.msk.bf16.vlgmr.msra.gmra.mxu0 %vm857_vm5, %v1084_v57 }
 0x662   : > { %1177 = vmatpush.bf16.msra.mxu1 %v1702_v60 }
 0x666   : > { %1178 = vmatpush.bf16.msra.mxu1 %v1701_v61 }
 0x6de   : > { %v1117_v63 = vpop.f32.mrf.mxu0 }
 0x6df   : > { %v1118_v0 = vadd.f32 %v1814_v62, %v1117_v63 }
 0x6e1   : > { %v1121_v1 = vmul.f32 %v1118_v0, %v1118_v0 }
 0x6e3   : > { %v1122_v2 = vmul.f32 %v1121_v1, %v1118_v0 }
 0x6e5   : > { %v1123_v3 = vmul.f32 0.044715, %v1122_v2 }
 0x6e6   : > { %v1119_v4 = vpop.f32.mrf.mxu0 }
 0x6e7   : > { %v1124_v5 = vadd.f32 %v1123_v3, %v1118_v0 }
 0x6e9   : > { %v1125_v6 = vmul.f32 0.7978846, %v1124_v5 }
 0x6eb   : > { %1818 = vtanh.f32 %v1125_v6 }
 0x6f1   : > { %v1819_v7 = vpop.eup %1818 }
 0x6f2   : > { %v1127_v8 = vadd.f32 1.0, %v1819_v7 }
 0x6f4   : > { %v1128_v9 = vmul.f32 0.5, %v1127_v8 }
 0x6f6   : > { %v1129_v10 = vmul.f32 %v1128_v9, %v1118_v0 }
 0x6f8   : > { %v1130_v11 = vpack.c.bf16 %v1129_v10, %v1129_v10 }
 0x6fa   : > { %1652 = vmatmul.msk.bf16.vlgmr.msra.gmra.mxu1 %vm1167_vm14, %v1130_v11 }
 0x777   : > { %v1180_v13 = vpop.f32.mrf.mxu1 }
 0x778   : > { %v1181_v14 = vadd.f32 %v1815_v12, %v1180_v13 }
 0x77a   : > { %v1184_v15 = vadd.f32 %v1181_v14, %v2242_v54 }
 0x77c   : > { %v1187_v16 = vsel %vm857_vm5, %v1184_v15, 0.0 }
 0x77d   : > { %1188 = vadd.xlane.f32.xlu0 %v1187_v16 }
 0x77f   : > { %v1182_v17 = vpop.f32.mrf.mxu1 }
 0x7f0   : > { %v1189_v18 = vpop.xlane.xlu0 %1188 }
 0x7f1   : > { %v1190_v19 = vmul.f32 %v1189_v18, %v2227_v35 }
 0x7f3   : > { %v1191_v20 = vsub.f32 %v1184_v15, %v1190_v19 }
 0x7f5   : > { %v1192_v21 = vmul.f32 %v1191_v20, %v1191_v20 }
 0x7f7   : > { %v1193_v22 = vsel %vm857_vm5, %v1192_v21, 0.0 }
 0x7f8   : > { %1194 = vadd.xlane.f32.xlu0 %v1193_v22 }
 0x86b   : > { %v1195_v23 = vpop.xlane.xlu0 %1194 }
 0x86c   : > { %v1196_v24 = vmul.f32 %v1195_v23, %v2227_v35 }
 0x86e   : > { %v1197_v25 = vadd.f32 1e-12, %v1196_v24 }
 0x870   : > { %1820 = vrsqrt.f32 %v1197_v25  ;;  %vm1204_vm0 = vweird.f32 %v1197_v25 }
 0x876   : > { %v1821_v26 = vpop.eup %1820 }
 0x877   : > { %v1199_v27 = vmul.f32 %v1821_v26, %v1197_v25  ;;  %vm1205_vm15 = vweird.f32 %v1821_v26 }
 0x878   : > { %vm1206_vm1 = vmor %vm1204_vm0, %vm1205_vm15 }
 0x879   : > { %v1200_v28 = vmul.f32 %v1821_v26, %v1199_v27 }
 0x87b   : > { %v1201_v29 = vmul.f32 0.5, %v1200_v28 }
 0x87d   : > { %v1202_v30 = vsub.f32 1.5, %v1201_v29 }
 0x87f   : > { %v1203_v32 = vmul.f32 %v1821_v26, %v1202_v30 }
 0x881   : > { %v1207_v34 = vsel %vm1206_vm1, %v1821_v26, %v1203_v32 }
 0x882   : > { %v1208_v37 = vmul.f32 %v1207_v34, %v1191_v20 }
 0x884   : > { %v1212_v38 = vmul.f32 %v1816_v33, %v1208_v37 }
 0x886   : > { %v1216_v31 = vadd.f32 %v1817_v36, %v1212_v38 }
 0x888   : > { %1217 = vst.msk [vmem:[#allocation2] sm:$0xff] %vm857_vm5, %v1216_v31 }
 0x889 PF: > { %s2419_s25 = sld [smem:[#allocation9_spill]] }
 0x88f   : > { %p1653_p2 = scmp.ne.s32.totalorder %s2419_s25, 1 }
 0x890   : > { %s2422_s26 = sld [smem:[#allocation30_spill]] (!%p1653_p2) }
 0x891   : > { %1221 = sbr.rel (%p1653_p2) target bundleno = 2901 (0xb55), region = 104 }
 0x896   : > { %v1706_v39 = vld [vmem:[%s2143_s16 + $0x8] sm:$0xff]  ;;  %v1705_v40 = vld [vmem:[%s2143_s16] sm:$0xff]  ;;  %v1222_v41 = vpack.c.bf16 %v2242_v54, %v2242_v54  ;;  %v1710_v42 = vld [vmem:[%s2161_s18 + $0x18] sm:$0xff]  ;;  %vm1299_vm2 = vcmask 523264   ;;  %vm1319_vm3 = vcmask 253952  }
 0x897   : > { %1249 = vmatpush.bf16.msra.mxu0 %v1706_v39  ;;  %1307 = vmatpush.bf16.msra.mxu1 %v1710_v42  ;;  %v1709_v43 = vld [vmem:[%s2161_s18 + $0x10] sm:$0xff]  ;;  %v1708_v44 = vld [vmem:[%s2161_s18 + $0x8] sm:$0xff]  ;;  %v1707_v45 = vld [vmem:[%s2161_s18] sm:$0xff] }
 0x898   : > { %v1227_v46 = vld [vmem:[%s2149_s30] sm:$0x1] }
 0x899   : > { %v1274_v61 = vld [vmem:[%s2156_s27] sm:$0x1]  ;;  %s2420_s27 = sld [smem:[#allocation29_spill]] }
 0x89a   : > { %v1317_v18 = vld [vmem:[%s2167_s3] sm:$0x1] }
 0x89b   : > { %1250 = vmatpush.bf16.msra.mxu0 %v1705_v40  ;;  %1308 = vmatpush.bf16.msra.mxu1 %v1709_v43  ;;  %v1318_v21 = vld [vmem:[%s2173_s6] sm:$0x1] }
 0x89e   : > { %1662 = vmatmul.msk.bf16.vlgmr.msra.gmra.mxu0 %vm857_vm5, %v1222_v41 }
 0x89f   : > { %1309 = vmatpush.bf16.msra.mxu1 %v1708_v44  ;;  %s2421_s18 = smov %s2420_s27  ;;  %v1712_v8 = vld [vmem:[%s2420_s27 + $0x8] sm:$0xff] }
 0x8a0   : > { %1371 = vmatpush.bf16.msra.mxu2 %v1712_v8 }
 0x8a3   : > { %1310 = vmatpush.bf16.msra.mxu1 %v1707_v45 }
 0x91b   : > { %v1252_v47 = vpop.f32.mrf.mxu0 }
 0x91c   : > { %v1253_v48 = vadd.f32 %v1252_v47, %v1227_v46 }
 0x91e   : > { %v1256_v49 = vmul.f32 %v1253_v48, %v1253_v48 }
 0x920   : > { %v1257_v50 = vmul.f32 %v1256_v49, %v1253_v48 }
 0x922   : > { %v1258_v51 = vmul.f32 0.044715, %v1257_v50 }
 0x923   : > { %v1254_v52 = vpop.f32.mrf.mxu0 }
 0x924   : > { %v1259_v53 = vadd.f32 %v1258_v51, %v1253_v48 }
 0x926   : > { %v1260_v55 = vmul.f32 0.7978846, %v1259_v53 }
 0x928   : > { %1822 = vtanh.f32 %v1260_v55 }
 0x92e   : > { %v1823_v56 = vpop.eup %1822 }
 0x92f   : > { %v1262_v57 = vadd.f32 1.0, %v1823_v56 }
 0x931   : > { %v1263_v58 = vmul.f32 0.5, %v1262_v57 }
 0x933   : > { %v1264_v59 = vmul.f32 %v1263_v58, %v1253_v48 }
 0x935   : > { %v1265_v60 = vpack.c.bf16 %v1264_v59, %v1264_v59 }
 0x937   : > { %1679 = vmatmul.msk.bf16.vlgmr.msra.gmra.mxu1 %vm1299_vm2, %v1265_v60 }
 0x9b4   : > { %v1312_v62 = vpop.f32.mrf.mxu1 }
 0x9b5   : > { %v1313_v63 = vadd.f32 %v1312_v62, %v1274_v61 }
 0x9b7   : > { %v1316_v0 = vadd.f32 %v1313_v63, %v2242_v54  ;;  %v1711_v54 = vld [vmem:[%s2421_s18] sm:$0xff] }
 0x9b8   : > { %1372 = vmatpush.bf16.msra.mxu2 %v1711_v54 }
 0x9b9   : > { %v1320_v1 = vsel %vm1319_vm3, %v1316_v0, 0.0 }
 0x9ba   : > { %1321 = vadd.xlane.f32.xlu0 %v1320_v1 }
 0x9bc   : > { %v1314_v2 = vpop.f32.mrf.mxu1 }
 0xa2d   : > { %v1322_v3 = vpop.xlane.xlu0 %1321 }
 0xa2e   : > { %v1323_v4 = vmul.f32 %v1322_v3, %v2227_v35 }
 0xa30   : > { %v1324_v5 = vsub.f32 %v1316_v0, %v1323_v4 }
 0xa32   : > { %v1325_v6 = vmul.f32 %v1324_v5, %v1324_v5 }
 0xa34   : > { %v1326_v7 = vsel %vm1319_vm3, %v1325_v6, 0.0 }
 0xa35   : > { %1327 = vadd.xlane.f32.xlu0 %v1326_v7 }
 0xaa8   : > { %v1328_v9 = vpop.xlane.xlu0 %1327 }
 0xaa9   : > { %v1329_v10 = vmul.f32 %v1328_v9, %v2227_v35  ;;  %v1349_v35 = vld [vmem:[%s2422_s26] sm:$0x1] }
 0xaab   : > { %v1330_v11 = vadd.f32 1e-12, %v1329_v10 }
 0xaad   : > { %1824 = vrsqrt.f32 %v1330_v11  ;;  %vm1337_vm6 = vweird.f32 %v1330_v11 }
 0xab3   : > { %v1825_v12 = vpop.eup %1824 }
 0xab4   : > { %v1332_v13 = vmul.f32 %v1825_v12, %v1330_v11  ;;  %vm1338_vm4 = vweird.f32 %v1825_v12 }
 0xab5   : > { %vm1339_vm7 = vmor %vm1337_vm6, %vm1338_vm4 }
 0xab6   : > { %v1333_v14 = vmul.f32 %v1825_v12, %v1332_v13 }
 0xab8   : > { %v1334_v15 = vmul.f32 0.5, %v1333_v14 }
 0xaba   : > { %v1335_v16 = vsub.f32 1.5, %v1334_v15 }
 0xabc   : > { %v1336_v17 = vmul.f32 %v1825_v12, %v1335_v16 }
 0xabe   : > { %v1340_v19 = vsel %vm1339_vm7, %v1825_v12, %v1336_v17 }
 0xabf   : > { %v1341_v20 = vmul.f32 %v1340_v19, %v1324_v5 }
 0xac1   : > { %v1342_v22 = vmul.f32 %v1341_v20, %v1317_v18 }
 0xac3   : > { %v1343_v23 = vadd.f32 %v1342_v22, %v1318_v21 }
 0xac5   : > { %v1344_v24 = vpack.c.bf16 %v1343_v23, %v1343_v23 }
 0xac7   : > { %1688 = vmatmul.msk.bf16.vlgmr.msra.gmra.mxu2 %vm857_vm5, %v1344_v24 }
 0xb4a   : > { %v1374_v25 = vpop.f32.mrf.mxu2 }
 0xb4b   : > { %v1375_v26 = vadd.f32 %v1374_v25, %v1349_v35 }
 0xb4d   : > { %1826 = vtanh.f32 %v1375_v26 }
 0xb52   : > { %v1376_v27 = vpop.f32.mrf.mxu2 }
 0xb53   : > { %v1827_v28 = vpop.eup %1826 }
 0xb54   : > { %1379 = vst.msk [vmem:[%s2177_s11] sm:$0x1] %vm1319_vm3, %v1827_v28 }
 0xb55 PF: > { %s2423_s3 = sld [smem:[#allocation10_spill]]  ;;  %s1391_s22 = sshll.u32 %s2177_s11, 4  ;;  %s1392_s22 = int_to_ptr.vmem [resolvable:$true] %s1391_s22 }
 0xb56   : > { %s2424_s23 = sld [smem:[#allocation31_spill]]  ;;  %s2426_s4 = sand.u32 1, %s1898_s28  }
 0xb57   : > { %s1381_s24 = scalar_lea.sflag [#allocation5], %s2426_s4 }
 0xb5c   : > { %s1389_s2 = scalar_lea.hbm %s2424_s23, %s2423_s3  ;;  %s1848_s30 = scalar_lea.hbm %s2424_s23, 2 }
 0xb5d   : > { %s1393_s0 = sshll.u32 %s1389_s2, 4  ;;  %s1394_s0 = int_to_ptr.hbm [resolvable:$true] %s1393_s0 }
 0xb5e   : > { %s1842_s17 = sshra.s32 %s1394_s0, 4  ;;  %s1843_s17 = int_to_ptr.hbm [resolvable:$true] %s1842_s17 }
 0xb5f   : > { %s1844_s14 = scalar_lea.hbm %s1843_s17, 1  ;;  %p1849_p7 = scmp.lt.s32.totalorder %s1843_s17, %s2424_s23 }
 0xb60   : > { %p1845_p4 = scmp.ne.s32.totalorder %s1843_s17, %s1844_s14  ;;  %p1850_p8 = scmp.lt.s32.totalorder %s1848_s30, %s1844_s14 }
 0xb62   : > { %p1846_p5 = pnand %p1845_p4, %p2076_p3  ;;  %p1851_p10 = por %p1850_p8, %p1849_p7 }
 0xb64   : > { %p1847_p6 = pneg %p1846_p5 }
 0xb66   : > { %p1852_p11 = pnand %p1851_p10, %p1847_p6 }
 0xb68   : > { %1855 = shalt.err (!%p1852_p11)
}
 0xb69   : > { %1713 = dma.vmem_to_hbm [thread:$0]  (%p2076_p3), %s1392_s22, 16, %s1394_s0, %s1381_s24  }
 0xb6a PF: > { %s2427_s11 = sld [smem:[#allocation13_spill]] }
 0xb6b   : > { %s2428_s29 = sld [smem:[#allocation7_spill]] }
 0xb70   : > { %p1719_p12 = scmp.ge.s32.totalorder %s2427_s11, 2 }
 0xb71   : > { %s1405_s1 = sand.u32 1, %s2428_s29  }
 0xb72   : > { %p1716_p13 = pnand %p1719_p12, %p2086_p9  ;;  %s1406_s20 = scalar_lea.sflag [#allocation5], %s1405_s1 }
 0xb74   : > { %p1717_p0 = pneg %p1716_p13 }
 0xb76   : > { %1889 = dma.done.wait (%p1717_p0), %s1406_s20, 16  }
 0xb77   : > { %1891 = vsyncadd (%p1717_p0), %s1406_s20, 4294967280  ;;  %s31_s20 = sadd.s32 1, %s2427_s11   ;;  %s2430_s26 = sld [smem:[#allocation8_spill]] }
 0xb78   : > { %p28_p1 = scmp.ge.s32.totalorder %s31_s20, 6   ;;  %s2431_s29 = sld [smem:[#allocation18_spill]] }
 0xb79   : > { %s2432_s30 = sld [smem:[#allocation11_spill]]  ;;  %s2436_s27 = smov %s1898_s28 }
 0xb7a   : > { %s2433_s0 = sld [smem:[#allocation12_spill]]  ;;  %30 = sbr.rel (!%p28_p1) target bundleno = 19 (0x13), region = 178 }
 0xb7b   : > { %s2434_s19 = sld [smem:[#allocation14_spill]] }
 0xb7c   : > { %s2435_s1 = sld [smem:[#allocation16_spill]] }
 0xb7d   : > { %s2437_s28 = smov %s2430_s26 }
 0xb7f   :  { %1411 = vsyncpa [#allocation5], 1 }
 0xb80   :  { %1413 = vsyncpa [#allocation5 + $0x1], 1 }

</bundles_post_ra>
